<compile_context>
chip_gen: v7x
topology: tpu7x:2x2x1
jax: 0.10.0
libtpu: 0.0.40
codegen_flags: <defaults>
</compile_context>

<pallas_src>
import jax
import jax.numpy as jnp
from jax.experimental import pallas as pl
from jax.experimental.pallas import tpu as pltpu

# ----------------------------- problem sizes -------------------------------
B = 2            # batch
C_IN = 32        # last_conv_dim (backbone output channels)
H = W = 8        # backbone spatial size (maxpool 3x3,s2,p1 -> 4x4)
D = 128          # downsample_dim
SP = 4           # last_spatial_dim
FC = 256         # fc_dim
NOUT = 6         # num_output
NPAD = 128       # lane-dense padded output width (wrapper slices to NOUT)


# ------------------------------- kernel ------------------------------------
def _localizer_kernel(x_ref, wc_ref, bc_ref, w1_hbm, b1_ref, w2_ref, b2_ref,
                      out_ref, w1_vmem, w1_sem):
    """Single invocation over the whole batch (no grid).

    x_ref : (B*H*W, C_IN) f32   NHWC rows (b, h, w) flattened, channels on lanes
    wc_ref: (C_IN, D)     bf16  1x1-conv weight, transposed
    bc_ref: (1, D)        f32
    w1_hbm: (SP*SP*D, FC) bf16  fc1 weight in HBM (memory_space=pl.ANY), rows
                                permuted to HWC flatten order; DMA'd manually
    b1_ref: (1, FC)       f32
    w2_ref: (FC, NPAD)    bf16  fc2 weight, zero-padded to 128 output columns
    b2_ref: (1, NPAD)     f32
    out_ref:(B, NPAD)     f32   lane-dense output block
    w1_vmem:(SP*SP*D, FC) bf16  VMEM landing buffer for w1
    w1_sem : DMA semaphore
    """
    # Kick off the dominant w1 HBM->VMEM fetch immediately; it overlaps the
    # conv + maxpool compute below and is only waited on right before fc1.
    w1_cp = pltpu.make_async_copy(w1_hbm, w1_vmem, w1_sem)
    w1_cp.start()

    # --- 1x1 conv == single matmul over channels, + bias, ReLU (f32 acc) ---
    # (activations deliberately cast to bf16; exact bf16*bf16 products, f32 acc)
    x = x_ref[...].astype(jnp.bfloat16)                       # (128, 32)
    y = jnp.dot(x, wc_ref[...], preferred_element_type=jnp.float32)
    y = jnp.maximum(y + bc_ref[...], 0.0)                     # (128, 128)
    y = y.reshape(B, H, W, D)                                  # (2, 8, 8, 128)

    # --- MaxPool2d(kernel=3, stride=2, padding=1): (8,8) -> (4,4) ---
    # Windows are clamped to the valid range instead of -inf padded; exact
    # because y >= 0 after the ReLU (a clamped-away 0 never wins the max).
    # Row (H) pooling: pairwise maxima of leading-axis slices (cross-slab, cheap).
    def row_max(i):
        lo, hi = max(0, 2 * i - 1), min(H, 2 * i + 2)
        m = y[:, lo]
        for r in range(lo + 1, hi):
            m = jnp.maximum(m, y[:, r])
        return m[:, None]                                      # (B, 1, W, D)

    rows = jnp.concatenate([row_max(i) for i in range(SP)], axis=1)  # (B,4,8,D)

    # Column (W) pooling: contiguous sublane windows, max-reduce, one concat.
    # (Off the critical path — the w1 DMA is what we are hiding underneath.)
    cols = [
        jnp.max(rows[:, :, max(0, 2 * j - 1):min(W, 2 * j + 2), :],
                axis=2, keepdims=True)
        for j in range(SP)
    ]
    p = jnp.concatenate(cols, axis=2)                          # (B, 4, 4, D)

    # --- flatten (h, w, c) + fc_loc (Dropout is identity in eval) ---
    flat = p.reshape(B, SP * SP * D).astype(jnp.bfloat16)      # (B, 2048)

    w1_cp.wait()                                               # w1 now in VMEM
    h = jnp.dot(flat, w1_vmem[...], preferred_element_type=jnp.float32)
    h = jnp.maximum(h + b1_ref[...], 0.0)                      # (B, FC)
    theta = jnp.dot(h.astype(jnp.bfloat16), w2_ref[...],
                    preferred_element_type=jnp.float32)
    out_ref[...] = theta + b2_ref[...]                         # (B, NPAD)


# ------------------------- one-time weight prep ------------------------------
def prepare_params(wconv, bconv, w1, b1, w2, b2):
    """Hoisted out of the per-call path — call once, reuse the results.

    PyTorch-convention shapes in: wconv (D, C_IN), bconv (D,), w1 (FC, D*SP*SP)
    with columns in (c, h, w) flatten order, b1 (FC,), w2 (NOUT, FC), b2 (NOUT,).
    """
    wc_k = jnp.asarray(wconv.T, jnp.bfloat16)                          # (C_IN, D)
    bc_k = jnp.asarray(bconv, jnp.float32).reshape(1, D)
    # fc1 rows: PyTorch flatten is (c, h, w); kernel flatten is (h, w, c).
    w1_k = jnp.asarray(
        w1.reshape(FC, D, SP, SP).transpose(0, 2, 3, 1).reshape(FC, SP * SP * D).T,
        jnp.bfloat16)                                                  # (2048, FC)
    b1_k = jnp.asarray(b1, jnp.float32).reshape(1, FC)
    # fc2: zero-pad output columns to a lane-dense width of 128.
    w2_k = jnp.zeros((FC, NPAD), jnp.float32).at[:, :NOUT].set(w2.T)
    w2_k = w2_k.astype(jnp.bfloat16)                                   # (FC, NPAD)
    b2_k = jnp.zeros((1, NPAD), jnp.float32).at[:, :NOUT].set(
        jnp.asarray(b2, jnp.float32).reshape(1, NOUT))
    return wc_k, bc_k, w1_k, b1_k, w2_k, b2_k


# ------------------------------- wrapper ------------------------------------
@jax.jit
def basic_localizer(x_nchw, wc_k, bc_k, w1_k, b1_k, w2_k, b2_k):
    """x_nchw: (B, C_IN, H, W); pre-permuted kernel weights from prepare_params.
    Returns theta (B, NOUT)."""
    # glue: NCHW -> NHWC rows, channels on lanes (16 KiB; see TODO above)
    x2 = jnp.transpose(x_nchw, (0, 2, 3, 1)).reshape(B * H * W, C_IN)

    vmem = pl.BlockSpec(memory_space=pltpu.MemorySpace.VMEM)   # whole array, VMEM

    out = pl.pallas_call(
        _localizer_kernel,
        out_shape=jax.ShapeDtypeStruct((B, NPAD), jnp.float32),
        # No grid: single invocation, whole-array blocks, single-buffered.
        in_specs=[
            vmem,                                # x2        (128, 32)   f32
            vmem,                                # wc        (32, 128)   bf16
            vmem,                                # bconv     (1, 128)    f32
            pl.BlockSpec(memory_space=pl.ANY),   # w1 stays in HBM, manual DMA
            vmem,                                # b1        (1, 256)    f32
            vmem,                                # w2        (256, 128)  bf16
            vmem,                                # b2        (1, 128)    f32
        ],
        out_specs=vmem,
        scratch_shapes=[
            pltpu.VMEM((SP * SP * D, FC), jnp.bfloat16),   # w1 landing buffer
            pltpu.SemaphoreType.DMA(()),                    # w1 DMA completion
        ],
    )(x2, wc_k, bc_k, w1_k, b1_k, w2_k, b2_k)
    return out[:, :NOUT]


# ----------------------- pure-JAX reference (NCHW) ---------------------------
def reference(x_nchw, wconv, bconv, w1, b1, w2, b2):
    y = jnp.einsum('bchw,dc->bdhw', x_nchw, wconv) + bconv[None, :, None, None]
    y = jnp.maximum(y, 0.0)
    yp = jnp.pad(y, ((0, 0), (0, 0), (1, 1), (1, 1)),
                 constant_values=-jnp.inf)
    pooled = jax.lax.reduce_window(yp, -jnp.inf, jax.lax.max,
                                   (1, 1, 3, 3), (1, 1, 2, 2), 'VALID')
    flat = pooled.reshape(B, -1)                   # CHW flatten (PyTorch view)
    h = jnp.maximum(flat @ w1.T + b1, 0.0)
    return h @ w2.T + b2


# --------------------------------- main --------------------------------------
if __name__ == "__main__":
    key = jax.random.PRNGKey(0)
    ks = jax.random.split(key, 8)

    x = jax.random.normal(ks[0], (B, C_IN, H, W), jnp.float32)
    # deterministic synthetic parameters (PyTorch-convention shapes)
    wconv = jax.random.normal(ks[1], (D, C_IN), jnp.float32) * 0.05
    bconv = jax.random.normal(ks[2], (D,), jnp.float32) * 0.05
    w1 = jax.random.normal(ks[3], (FC, D * SP * SP), jnp.float32) * 0.02
    b1 = jax.random.normal(ks[4], (FC,), jnp.float32) * 0.02
    w2 = jax.random.normal(ks[5], (NOUT, FC), jnp.float32) * 0.02
    b2 = jax.random.normal(ks[6], (NOUT,), jnp.float32) * 0.02

    # The kernel consumes bf16 weights; compare against a reference that uses the
    # same bf16-quantized values so the check isolates kernel correctness.
    q = lambda a: a.astype(jnp.bfloat16).astype(jnp.float32)
    wconv_q, w1_q, w2_q, x_q = q(wconv), q(w1), q(w2), q(x)

    params = prepare_params(wconv_q, bconv, w1_q, b1, w2_q, b2)   # once, hoisted
    theta = basic_localizer(x_q, *params)
    theta = jax.block_until_ready(theta)

    ref = reference(x_q, wconv_q, bconv, w1_q, b1, w2_q, b2)
    assert theta.shape == (B, NOUT)
    assert jnp.allclose(theta, ref, atol=1e-2, rtol=2e-2), (theta, ref)

    print("KERNEL_OK")
</pallas_src>

<mosaic_0001>
module attributes {stable_mosaic.version = 11 : i64} {
  func.func @_localizer_kernel(%arg0: memref<128x32xf32, #tpu.memory_space<vmem>>, %arg1: memref<32x128xbf16, #tpu.memory_space<vmem>>, %arg2: memref<1x128xf32, #tpu.memory_space<vmem>>, %arg3: memref<2048x256xbf16, #tpu.memory_space<any>>, %arg4: memref<1x256xf32, #tpu.memory_space<vmem>>, %arg5: memref<256x128xbf16, #tpu.memory_space<vmem>>, %arg6: memref<1x128xf32, #tpu.memory_space<vmem>>, %arg7: memref<2x128xf32, #tpu.memory_space<vmem>>, %arg8: memref<2048x256xbf16, #tpu.memory_space<vmem>>, %arg9: memref<!tpu.dma_semaphore, #tpu.memory_space<semaphore_mem>>) attributes {dimension_semantics = [], scalar_prefetch = 0 : i64, scratch_operands = 2 : i64, tpu.core_type = #tpu.core_type<tc>} {
    tpu.enqueue_dma source(%arg3 : memref<2048x256xbf16, #tpu.memory_space<any>>) target(%arg8 : memref<2048x256xbf16, #tpu.memory_space<vmem>>) target_semaphore(%arg9 : memref<!tpu.dma_semaphore, #tpu.memory_space<semaphore_mem>>)
    %c0 = arith.constant 0 : index
    %c0_0 = arith.constant 0 : index
    %0 = vector.load %arg0[%c0, %c0_0] : memref<128x32xf32, #tpu.memory_space<vmem>>, vector<128x32xf32>
    %1 = arith.truncf %0 : vector<128x32xf32> to vector<128x32xbf16>
    %c0_1 = arith.constant 0 : index
    %c0_2 = arith.constant 0 : index
    %2 = vector.load %arg1[%c0_1, %c0_2] : memref<32x128xbf16, #tpu.memory_space<vmem>>, vector<32x128xbf16>
    %cst = arith.constant dense<0.000000e+00> : vector<128x128xf32>
    %3 = tpu.matmul %1, %2, %cst {dimension_numbers = #tpu.dot_dimension_numbers<[1], [0], [0], [1], [0, 0, 1, 1], [], []>} : vector<128x32xbf16>, vector<32x128xbf16>, vector<128x128xf32> -> vector<128x128xf32>
    %c0_3 = arith.constant 0 : index
    %c0_4 = arith.constant 0 : index
    %4 = vector.load %arg2[%c0_3, %c0_4] : memref<1x128xf32, #tpu.memory_space<vmem>>, vector<1x128xf32>
    %5 = vector.broadcast %4 : vector<1x128xf32> to vector<128x128xf32>
    %6 = arith.addf %3, %5 : vector<128x128xf32>
    %cst_5 = arith.constant 0.000000e+00 : f32
    %7 = vector.broadcast %cst_5 : f32 to vector<128x128xf32>
    %8 = arith.maximumf %6, %7 : vector<128x128xf32>
    %9 = vector.shape_cast %8 : vector<128x128xf32> to vector<2x8x8x128xf32>
    %10 = vector.extract_strided_slice %9 {offsets = [0, 0, 0, 0], sizes = [2, 1, 8, 128], strides = [1, 1, 1, 1]} : vector<2x8x8x128xf32> to vector<2x1x8x128xf32>
    %11 = vector.shape_cast %10 : vector<2x1x8x128xf32> to vector<2x8x128xf32>
    %12 = vector.extract_strided_slice %9 {offsets = [0, 1, 0, 0], sizes = [2, 1, 8, 128], strides = [1, 1, 1, 1]} : vector<2x8x8x128xf32> to vector<2x1x8x128xf32>
    %13 = vector.shape_cast %12 : vector<2x1x8x128xf32> to vector<2x8x128xf32>
    %14 = arith.maximumf %11, %13 : vector<2x8x128xf32>
    %15 = vector.shape_cast %14 : vector<2x8x128xf32> to vector<2x1x8x128xf32>
    %16 = vector.extract_strided_slice %9 {offsets = [0, 1, 0, 0], sizes = [2, 1, 8, 128], strides = [1, 1, 1, 1]} : vector<2x8x8x128xf32> to vector<2x1x8x128xf32>
    %17 = vector.shape_cast %16 : vector<2x1x8x128xf32> to vector<2x8x128xf32>
    %18 = vector.extract_strided_slice %9 {offsets = [0, 2, 0, 0], sizes = [2, 1, 8, 128], strides = [1, 1, 1, 1]} : vector<2x8x8x128xf32> to vector<2x1x8x128xf32>
    %19 = vector.shape_cast %18 : vector<2x1x8x128xf32> to vector<2x8x128xf32>
    %20 = arith.maximumf %17, %19 : vector<2x8x128xf32>
    %21 = vector.extract_strided_slice %9 {offsets = [0, 3, 0, 0], sizes = [2, 1, 8, 128], strides = [1, 1, 1, 1]} : vector<2x8x8x128xf32> to vector<2x1x8x128xf32>
    %22 = vector.shape_cast %21 : vector<2x1x8x128xf32> to vector<2x8x128xf32>
    %23 = arith.maximumf %20, %22 : vector<2x8x128xf32>
    %24 = vector.shape_cast %23 : vector<2x8x128xf32> to vector<2x1x8x128xf32>
    %25 = vector.extract_strided_slice %9 {offsets = [0, 3, 0, 0], sizes = [2, 1, 8, 128], strides = [1, 1, 1, 1]} : vector<2x8x8x128xf32> to vector<2x1x8x128xf32>
    %26 = vector.shape_cast %25 : vector<2x1x8x128xf32> to vector<2x8x128xf32>
    %27 = vector.extract_strided_slice %9 {offsets = [0, 4, 0, 0], sizes = [2, 1, 8, 128], strides = [1, 1, 1, 1]} : vector<2x8x8x128xf32> to vector<2x1x8x128xf32>
    %28 = vector.shape_cast %27 : vector<2x1x8x128xf32> to vector<2x8x128xf32>
    %29 = arith.maximumf %26, %28 : vector<2x8x128xf32>
    %30 = vector.extract_strided_slice %9 {offsets = [0, 5, 0, 0], sizes = [2, 1, 8, 128], strides = [1, 1, 1, 1]} : vector<2x8x8x128xf32> to vector<2x1x8x128xf32>
    %31 = vector.shape_cast %30 : vector<2x1x8x128xf32> to vector<2x8x128xf32>
    %32 = arith.maximumf %29, %31 : vector<2x8x128xf32>
    %33 = vector.shape_cast %32 : vector<2x8x128xf32> to vector<2x1x8x128xf32>
    %34 = vector.extract_strided_slice %9 {offsets = [0, 5, 0, 0], sizes = [2, 1, 8, 128], strides = [1, 1, 1, 1]} : vector<2x8x8x128xf32> to vector<2x1x8x128xf32>
    %35 = vector.shape_cast %34 : vector<2x1x8x128xf32> to vector<2x8x128xf32>
    %36 = vector.extract_strided_slice %9 {offsets = [0, 6, 0, 0], sizes = [2, 1, 8, 128], strides = [1, 1, 1, 1]} : vector<2x8x8x128xf32> to vector<2x1x8x128xf32>
    %37 = vector.shape_cast %36 : vector<2x1x8x128xf32> to vector<2x8x128xf32>
    %38 = arith.maximumf %35, %37 : vector<2x8x128xf32>
    %39 = vector.extract_strided_slice %9 {offsets = [0, 7, 0, 0], sizes = [2, 1, 8, 128], strides = [1, 1, 1, 1]} : vector<2x8x8x128xf32> to vector<2x1x8x128xf32>
    %40 = vector.shape_cast %39 : vector<2x1x8x128xf32> to vector<2x8x128xf32>
    %41 = arith.maximumf %38, %40 : vector<2x8x128xf32>
    %42 = vector.shape_cast %41 : vector<2x8x128xf32> to vector<2x1x8x128xf32>
    %43 = tpu.concatenate %15, %24, %33, %42 in 1 : vector<2x1x8x128xf32>, vector<2x1x8x128xf32>, vector<2x1x8x128xf32>, vector<2x1x8x128xf32> -> vector<2x4x8x128xf32>
    %44 = vector.extract_strided_slice %43 {offsets = [0, 0, 0, 0], sizes = [2, 4, 2, 128], strides = [1, 1, 1, 1]} : vector<2x4x8x128xf32> to vector<2x4x2x128xf32>
    %cst_6 = arith.constant dense<0xFF800000> : vector<2x4x128xf32>
    %45 = vector.multi_reduction <maximumf>, %44, %cst_6 [2] : vector<2x4x2x128xf32> to vector<2x4x128xf32>
    %46 = vector.shape_cast %45 : vector<2x4x128xf32> to vector<2x4x1x128xf32>
    %47 = vector.extract_strided_slice %43 {offsets = [0, 0, 1, 0], sizes = [2, 4, 3, 128], strides = [1, 1, 1, 1]} : vector<2x4x8x128xf32> to vector<2x4x3x128xf32>
    %cst_7 = arith.constant dense<0xFF800000> : vector<2x4x128xf32>
    %48 = vector.multi_reduction <maximumf>, %47, %cst_7 [2] : vector<2x4x3x128xf32> to vector<2x4x128xf32>
    %49 = vector.shape_cast %48 : vector<2x4x128xf32> to vector<2x4x1x128xf32>
    %50 = vector.extract_strided_slice %43 {offsets = [0, 0, 3, 0], sizes = [2, 4, 3, 128], strides = [1, 1, 1, 1]} : vector<2x4x8x128xf32> to vector<2x4x3x128xf32>
    %cst_8 = arith.constant dense<0xFF800000> : vector<2x4x128xf32>
    %51 = vector.multi_reduction <maximumf>, %50, %cst_8 [2] : vector<2x4x3x128xf32> to vector<2x4x128xf32>
    %52 = vector.shape_cast %51 : vector<2x4x128xf32> to vector<2x4x1x128xf32>
    %53 = vector.extract_strided_slice %43 {offsets = [0, 0, 5, 0], sizes = [2, 4, 3, 128], strides = [1, 1, 1, 1]} : vector<2x4x8x128xf32> to vector<2x4x3x128xf32>
    %cst_9 = arith.constant dense<0xFF800000> : vector<2x4x128xf32>
    %54 = vector.multi_reduction <maximumf>, %53, %cst_9 [2] : vector<2x4x3x128xf32> to vector<2x4x128xf32>
    %55 = vector.shape_cast %54 : vector<2x4x128xf32> to vector<2x4x1x128xf32>
    %56 = tpu.concatenate %46, %49, %52, %55 in 2 : vector<2x4x1x128xf32>, vector<2x4x1x128xf32>, vector<2x4x1x128xf32>, vector<2x4x1x128xf32> -> vector<2x4x4x128xf32>
    %57 = vector.shape_cast %56 : vector<2x4x4x128xf32> to vector<2x2048xf32>
    %58 = arith.truncf %57 : vector<2x2048xf32> to vector<2x2048xbf16>
    tpu.wait_dma2 semaphore(%arg9 : memref<!tpu.dma_semaphore, #tpu.memory_space<semaphore_mem>>) src(%arg3 : memref<2048x256xbf16, #tpu.memory_space<any>>) dst(%arg8 : memref<2048x256xbf16, #tpu.memory_space<vmem>>)
    %c0_10 = arith.constant 0 : index
    %c0_11 = arith.constant 0 : index
    %59 = vector.load %arg8[%c0_10, %c0_11] : memref<2048x256xbf16, #tpu.memory_space<vmem>>, vector<2048x256xbf16>
    %cst_12 = arith.constant dense<0.000000e+00> : vector<2x256xf32>
    %60 = tpu.matmul %58, %59, %cst_12 {dimension_numbers = #tpu.dot_dimension_numbers<[1], [0], [0], [1], [0, 0, 1, 1], [], []>} : vector<2x2048xbf16>, vector<2048x256xbf16>, vector<2x256xf32> -> vector<2x256xf32>
    %c0_13 = arith.constant 0 : index
    %c0_14 = arith.constant 0 : index
    %61 = vector.load %arg4[%c0_13, %c0_14] : memref<1x256xf32, #tpu.memory_space<vmem>>, vector<1x256xf32>
    %62 = vector.broadcast %61 : vector<1x256xf32> to vector<2x256xf32>
    %63 = arith.addf %60, %62 : vector<2x256xf32>
    %cst_15 = arith.constant 0.000000e+00 : f32
    %64 = vector.broadcast %cst_15 : f32 to vector<2x256xf32>
    %65 = arith.maximumf %63, %64 : vector<2x256xf32>
    %66 = arith.truncf %65 : vector<2x256xf32> to vector<2x256xbf16>
    %c0_16 = arith.constant 0 : index
    %c0_17 = arith.constant 0 : index
    %67 = vector.load %arg5[%c0_16, %c0_17] : memref<256x128xbf16, #tpu.memory_space<vmem>>, vector<256x128xbf16>
    %cst_18 = arith.constant dense<0.000000e+00> : vector<2x128xf32>
    %68 = tpu.matmul %66, %67, %cst_18 {dimension_numbers = #tpu.dot_dimension_numbers<[1], [0], [0], [1], [0, 0, 1, 1], [], []>} : vector<2x256xbf16>, vector<256x128xbf16>, vector<2x128xf32> -> vector<2x128xf32>
    %c0_19 = arith.constant 0 : index
    %c0_20 = arith.constant 0 : index
    %69 = vector.load %arg6[%c0_19, %c0_20] : memref<1x128xf32, #tpu.memory_space<vmem>>, vector<1x128xf32>
    %70 = vector.broadcast %69 : vector<1x128xf32> to vector<2x128xf32>
    %71 = arith.addf %68, %70 : vector<2x128xf32>
    %c0_21 = arith.constant 0 : index
    %c0_22 = arith.constant 0 : index
    %72 = vector.load %arg7[%c0_21, %c0_22] : memref<2x128xf32, #tpu.memory_space<vmem>>, vector<2x128xf32>
    tpu.vector_store %arg7[%c0_21, %c0_22], %71 {strides = array<i32>} : memref<2x128xf32, #tpu.memory_space<vmem>>, vector<2x128xf32>,
    return
  }
}

</mosaic_0001>

<bundles_post_ra>
// kernel: basic_localizer.1
= control target key start
LH: loop header
LB: loop body
LE: loop exit
PB: predicated region body
PF: predicated region fallthrough
CT: control target
= control target key end

     0   :  { %12 = vsyncpa [#allocation5], 0  ;;  %s2138_s0 = inlined_call_operand.hbm [shape: f32[128,32], index: 0, kind: input, shape index: {}]   ;;  %s2139_s1 = inlined_call_operand.hbm [shape: bf16[32,128], index: 1, kind: input, shape index: {}]   ;;  %s2140_s2 = inlined_call_operand.vmem [shape: f32[1,128], index: 2, kind: input, shape index: {}]   ;;  %s2141_s3 = inlined_call_operand.hbm [shape: bf16[2048,256], index: 3, kind: input, shape index: {}]   ;;  %s2142_s4 = inlined_call_operand.vmem [shape: f32[1,256], index: 4, kind: input, shape index: {}]   ;;  %s2143_s5 = inlined_call_operand.hbm [shape: bf16[256,128], index: 5, kind: input, shape index: {}]   ;;  %s2144_s6 = inlined_call_operand.vmem [shape: f32[1,128], index: 6, kind: input, shape index: {}]   ;;  %s2145_s7 = inlined_call_operand.hbm [shape: f32[2,128], index: 7, kind: output, shape index: {}]  }
   0x1   :  { %13 = vsyncpa [#allocation8], 0 }
   0x2   :  { %14 = vsyncpa [#allocation6], 0  ;;  %s1668_s24 = smov [#allocation7]   ;;  %s1572_s28 = scalar_lea.hbm %s2139_s1, 256 }
   0x3   :  { %s32_s25 = sshll.u32 %s1668_s24, 4  ;;  %p1573_p0 = scmp.ne.s32.totalorder %s2139_s1, %s1572_s28  ;;  %s33_s25 = int_to_ptr.vmem [resolvable:$true] %s32_s25 }
   0x4   :  { %p1576_p1 = scmp.lt.u32.totalorder %s1572_s28, %s2139_s1 }
   0x6   :  { %p1578_p2 = pnand %p1576_p1, %p1573_p0 }
   0x8   :  { %1581 = shalt.err (!%p1578_p2)
}
   0x9   :  { %s1582_s10 = scalar_lea.vmem %s33_s25, 256  ;;  %p1587_p4 = scmp.lt.s32.totalorder %s33_s25, %s33_s25 }
   0xa   :  { %p1583_p3 = scmp.ne.s32.totalorder %s33_s25, %s1582_s10  ;;  %p1588_p5 = scmp.lt.s32.totalorder %s1582_s10, %s1582_s10 }
   0xc   :  { %p1589_p6 = por %p1588_p5, %p1587_p4 }
   0xe   :  { %p1590_p7 = pnand %p1589_p6, %p1583_p3 }
  0x10   :  { %1593 = shalt.err (!%p1590_p7)
}
  0x11   :  { %s1669_s11 = smov 64   ;;  %s1670_s12 = smov 4  }
  0x12   :  { %38 = dma.hbm_to_vmem [thread:$0]  %s2139_s1, 256, %s33_s25, [#allocation8], %s1669_s11, %s1669_s11, %s1670_s12  }
  0x13   :  { %s1671_s15 = smov [#allocation4]   ;;  %s1594_s19 = scalar_lea.hbm %s2138_s0, 2048 }
  0x14   :  { %s20_s16 = sshll.u32 %s1671_s15, 4  ;;  %p1595_p8 = scmp.ne.s32.totalorder %s2138_s0, %s1594_s19  ;;  %s21_s16 = int_to_ptr.vmem [resolvable:$true] %s20_s16 }
  0x15   :  { %p1598_p9 = scmp.lt.u32.totalorder %s1594_s19, %s2138_s0 }
  0x17   :  { %p1600_p10 = pnand %p1598_p9, %p1595_p8 }
  0x19   :  { %1603 = shalt.err (!%p1600_p10)
}
  0x1a   :  { %s1604_s24 = scalar_lea.vmem %s21_s16, 2048  ;;  %p1609_p12 = scmp.lt.s32.totalorder %s21_s16, %s21_s16 }
  0x1b   :  { %p1605_p11 = scmp.ne.s32.totalorder %s21_s16, %s1604_s24  ;;  %p1610_p13 = scmp.lt.s32.totalorder %s1604_s24, %s1604_s24 }
  0x1d   :  { %p1611_p0 = por %p1610_p13, %p1609_p12 }
  0x1f   :  { %p1612_p1 = pnand %p1611_p0, %p1605_p11 }
  0x21   :  { %1615 = shalt.err (!%p1612_p1)
}
  0x22   :  { %s1672_s1 = smov 128   ;;  %s1673_s25 = smov 8  }
  0x23   :  { %26 = dma.hbm_to_vmem [thread:$0]  %s2138_s0, 2048, %s21_s16, [#allocation5], %s1672_s1, %s1672_s1, %s1673_s25  }
  0x24   :  { %s1674_s28 = smov [#allocation9]   ;;  %s1616_s9 = scalar_lea.hbm %s2143_s5, 2048 }
  0x25   :  { %s48_s29 = sshll.u32 %s1674_s28, 4  ;;  %p1617_p2 = scmp.ne.s32.totalorder %s2143_s5, %s1616_s9  ;;  %s49_s29 = int_to_ptr.vmem [resolvable:$true] %s48_s29 }
  0x26   :  { %p1620_p3 = scmp.lt.u32.totalorder %s1616_s9, %s2143_s5 }
  0x28   :  { %p1622_p4 = pnand %p1620_p3, %p1617_p2 }
  0x2a   :  { %1625 = shalt.err (!%p1622_p4)
}
  0x2b   :  { %s1626_s17 = scalar_lea.vmem %s49_s29, 2048  ;;  %p1631_p6 = scmp.lt.s32.totalorder %s49_s29, %s49_s29 }
  0x2c   :  { %p1627_p5 = scmp.ne.s32.totalorder %s49_s29, %s1626_s17  ;;  %p1632_p7 = scmp.lt.s32.totalorder %s1626_s17, %s1626_s17 }
  0x2e   :  { %p1633_p8 = por %p1632_p7, %p1631_p6 }
  0x30   :  { %p1634_p9 = pnand %p1633_p8, %p1627_p5 }
  0x32   :  { %1637 = shalt.err (!%p1634_p9)
}
  0x33   :  { %54 = dma.hbm_to_vmem [thread:$0]  %s2143_s5, 2048, %s49_s29, [#allocation8], %s1669_s11, %s1669_s11, %s1670_s12  }
  0x34   :  { %1660 = dma.done.wait [#allocation5], 2048  }
  0x35   :  { %1661 = vsyncadd [#allocation5], 4294965248 }
  0x36   :  { %1662 = dma.done.wait [#allocation8], 2304  }
  0x37   :  { %1663 = vsyncadd [#allocation8], 4294964992  ;;  %s71_s18 = sld [smem:[#allocation0]]   ;;  %s1675_s19 = smov 256   ;;  %vm149_vm0 = vcmask 261120   ;;  %vm301_vm1 = vcmask 1041408  }
  0x38   :  { %83 = sst [smem:[#allocation12]] %s1675_s19  ;;  %s1676_s20 = smov 2   ;;  %vm358_vm2 = vcmask 1043457   ;;  %vm415_vm3 = vcmask 1045507   ;;  %vm472_vm4 = vcmask 1047557   ;;  %vm529_vm5 = vcmask 1040384  }
  0x39   :  { %85 = sst [smem:[#allocation12 + $0x1]] %s1675_s19  ;;  %s1677_s21 = smov [#allocation2]   ;;  %vm546_vm6 = vcmask 1042432   ;;  %vm557_vm7 = vcmask 1041409  }
  0x3a   :  { %87 = sst [smem:[#allocation12 + $0x2]] %s1676_s20  ;;  %s79_s22 = sshll.u32 %s1677_s21, 4  ;;  %s80_s22 = int_to_ptr.vmem [resolvable:$true] %s79_s22 }
  0x3b   :  { %89 = sst [smem:[#allocation12 + $0x3]] %s1669_s11  ;;  %s1678_s24 = smov [#allocation3]  }
  0x3c   :  { %91 = sst [smem:[#allocation12 + $0x4]] %s1672_s1  ;;  %s1679_s25 = smov [#allocation11]  }
  0x3d   :  { %93 = sst [smem:[#allocation12 + $0x5]] %s1676_s20  ;;  %s1430_s23 = sshll.u32 %s71_s18, 26 }
  0x3e   :  { %95 = sst [smem:[#allocation12 + $0x6]] %s1672_s1  ;;  %s1431_s5 = sadd.s32 134217728, %s1430_s23 }
  0x3f   :  { %97 = sst [smem:[#allocation12 + $0x7]] %s1669_s11 }
  0x40   :  { %99 = sst [smem:[#allocation12 + $0x8]] %s1670_s12 }
  0x41   :  { %101 = dma.general %s2141_s3, 32768, %s80_s22, %s1678_s24, %s1679_s25, [#allocation12], %s1431_s5, 0  }
  0x42   :  { %v1554_v0 = vld [vmem:[#allocation7] sm:$0xff]   ;;  %v1555_v1 = vld [vmem:[#allocation7 + $0x8] sm:$0xff]   ;;  %v104_v5 = vld [vmem:[#allocation4 + $0x10] sm:$0xff] }
  0x43   :  { %1493 = vmatprep.subr.bf16.mxu1 %v1554_v0  ;;  %v102_v2 = vld [vmem:[#allocation4] sm:$0xff]  ;;  %v103_v3 = vld [vmem:[#allocation4 + $0x8] sm:$0xff]  ;;  %v105_v6 = vld [vmem:[#allocation4 + $0x18] sm:$0xff] }
  0x44   :  { %1494 = vmatpush3.bf16.msra.mxu1 %v1554_v0  ;;  %v118_v4 = vpack.c.bf16 %v103_v3, %v102_v2  ;;  %v106_v7 = vld [vmem:[#allocation4 + $0x20] sm:$0xff]  ;;  %v107_v8 = vld [vmem:[#allocation4 + $0x28] sm:$0xff]  ;;  %v119_v9 = vpack.c.bf16 %v105_v6, %v104_v5  ;;  %v108_v11 = vld [vmem:[#allocation4 + $0x30] sm:$0xff] }
  0x45   :  { %1495 = vmatprep.subr.bf16.mxu1 %v1555_v1  ;;  %v120_v10 = vpack.c.bf16 %v107_v8, %v106_v7  ;;  %v109_v12 = vld [vmem:[#allocation4 + $0x38] sm:$0xff]  ;;  %v110_v13 = vld [vmem:[#allocation4 + $0x40] sm:$0xff]  ;;  %v111_v14 = vld [vmem:[#allocation4 + $0x48] sm:$0xff] }
  0x46   :  { %1497 = vmatprep.mubr.msk.bf16.mxu1 %vm149_vm0, %v118_v4  ;;  %v121_v15 = vpack.c.bf16 %v109_v12, %v108_v11  ;;  %v122_v16 = vpack.c.bf16 %v111_v14, %v110_v13  ;;  %v112_v17 = vld [vmem:[#allocation4 + $0x50] sm:$0xff]  ;;  %v113_v18 = vld [vmem:[#allocation4 + $0x58] sm:$0xff]  ;;  %v114_v19 = vld [vmem:[#allocation4 + $0x60] sm:$0xff] }
  0x47   :  { %v115_v20 = vld [vmem:[#allocation4 + $0x68] sm:$0xff]  ;;  %v123_v21 = vpack.c.bf16 %v113_v18, %v112_v17  ;;  %v116_v23 = vld [vmem:[#allocation4 + $0x70] sm:$0xff]  ;;  %v117_v24 = vld [vmem:[#allocation4 + $0x78] sm:$0xff] }
  0x48   :  { %1496 = vmatpush3.bf16.msra.mxu1 %v1555_v1  ;;  %v124_v22 = vpack.c.bf16 %v115_v20, %v114_v19  ;;  %v125_v25 = vpack.c.bf16 %v117_v24, %v116_v23  ;;  %v1784_v26 = vld [vmem:[%s2140_s2] ss:$0 sm:$0xff] }
  0x4b   :  { %1498 = vmatmul.mubr.msk.bf16.vlgmr.msra.gmra.mrb[0].mxu1 %vm149_vm0, %v119_v9 }
  0x4c   :  { %1501 = vmatprep.mubr.msk.bf16.mxu1 %vm149_vm0, %v120_v10 }
  0x53   :  { %1502 = vmatmul.mubr.msk.bf16.gmra.mrb[4].mxu1 %vm149_vm0, %v121_v15 }
  0x54   :  { %1505 = vmatprep.mubr.msk.bf16.mxu1 %vm149_vm0, %v122_v16 }
  0x5b   :  { %1506 = vmatmul.mubr.msk.bf16.gmra.mrb[8].mxu1 %vm149_vm0, %v123_v21 }
  0x5c   :  { %1509 = vmatprep.mubr.msk.bf16.mxu1 %vm149_vm0, %v124_v22 }
  0x63   :  { %1510 = vmatmul.mubr.msk.bf16.gmra.mrb[12].mxu1 %vm149_vm0, %v125_v25 }
 0x11e   :  { %v1499_v27 = vpop.f32.mrb[0].mxu1 }
 0x11f   :  { %v208_v28 = vpop.f32.mrb[1].mxu1  ;;  %v217_v29 = vadd.f32 %v1499_v27, %v1784_v26 }
 0x120   :  { %v209_v30 = vadd.f32 %v1784_v26, %v208_v28  ;;  %v1500_v31 = vpop.f32.mrb[2].mxu1 }
 0x121   :  { %v211_v32 = vpop.f32.mrb[3].mxu1  ;;  %v1789_v33 = vadd.f32 %v1500_v31, %v1784_v26  ;;  %v273_v35 = vmax.f32 %v217_v29, 0.0 }
 0x122   :  { %v212_v34 = vadd.f32 %v1784_v26, %v211_v32  ;;  %v271_v36 = vmax.f32 %v209_v30, 0.0 }
 0x123   :  { %v274_v38 = vmax.f32 %v1789_v33, 0.0 }
 0x124   :  { %v272_v37 = vmax.f32 %v212_v34, 0.0 }
 0x126   :  { %v287_v39 = vmax.f32 %v271_v36, %v272_v37  ;;  %v289_v40 = vmax.f32 %v272_v37, %v273_v35  ;;  %v1793_v41 = vpop.f32.mrb[4].mxu1 }
 0x127   :  { %v1795_v42 = vpop.f32.mrb[5].mxu1 }
 0x128   :  { %v291_v43 = vmax.f32 %v289_v40, %v274_v38  ;;  %v302_v44 = vsel %vm301_vm1, %v287_v39, -inf  ;;  %v359_v45 = vsel %vm358_vm2, %v287_v39, -inf  ;;  %v416_v46 = vsel %vm415_vm3, %v287_v39, -inf  ;;  %v1802_v47 = vpop.f32.mrb[6].mxu1 }
 0x129   :  { %v303_v48 = vrot.slane %v302_v44, 4  ;;  %v360_v49 = vrot.slane %v359_v45, 4  ;;  %v417_v50 = vrot.slane %v416_v46, 4  ;;  %v473_v51 = vsel %vm472_vm4, %v287_v39, -inf  ;;  %v227_v52 = vpop.f32.mrb[7].mxu1 }
 0x12a   :  { %v309_v53 = vsel %vm301_vm1, %v291_v43, -inf  ;;  %v366_v54 = vsel %vm358_vm2, %v291_v43, -inf  ;;  %v423_v55 = vsel %vm415_vm3, %v291_v43, -inf  ;;  %v474_v56 = vrot.slane %v473_v51, 4 }
 0x12b   :  { %v304_v57 = vmax.f32 %v302_v44, %v303_v48  ;;  %v310_v58 = vrot.slane %v309_v53, 4  ;;  %v361_v59 = vmax.f32 %v359_v45, %v360_v49  ;;  %v367_v60 = vrot.slane %v366_v54, 4 }
 0x12c   :  { %v418_v61 = vmax.f32 %v416_v46, %v417_v50  ;;  %v424_v62 = vrot.slane %v423_v55, 4  ;;  %v475_v63 = vmax.f32 %v473_v51, %v474_v56  ;;  %v480_v0 = vsel %vm472_vm4, %v291_v43, -inf }
 0x12d   :  { %v305_v1 = vrot.slane %v304_v57, 2  ;;  %v311_v2 = vmax.f32 %v309_v53, %v310_v58  ;;  %v362_v3 = vrot.slane %v361_v59, 2  ;;  %v368_v4 = vmax.f32 %v366_v54, %v367_v60 }
 0x12e   :  { %v419_v5 = vrot.slane %v418_v61, 2  ;;  %v425_v6 = vmax.f32 %v423_v55, %v424_v62  ;;  %v476_v7 = vrot.slane %v475_v63, 2  ;;  %v481_v8 = vrot.slane %v480_v0, 4  ;;  %v1507_v9 = vpop.f32.mrb[8].mxu1 }
 0x12f   :  { %v306_v10 = vmax.f32 %v304_v57, %v305_v1  ;;  %v312_v11 = vrot.slane %v311_v2, 2  ;;  %v363_v12 = vmax.f32 %v361_v59, %v362_v3  ;;  %v369_v13 = vrot.slane %v368_v4, 2  ;;  %v240_v14 = vpop.f32.mrb[9].mxu1 }
 0x130   :  { %v420_v15 = vmax.f32 %v418_v61, %v419_v5  ;;  %v426_v16 = vrot.slane %v425_v6, 2  ;;  %v477_v17 = vmax.f32 %v475_v63, %v476_v7  ;;  %v482_v18 = vmax.f32 %v480_v0, %v481_v8  ;;  %v1809_v19 = vpop.f32.mrb[10].mxu1 }
 0x131   :  { %v307_v20 = vrot.slane %v306_v10, 1  ;;  %v313_v21 = vmax.f32 %v311_v2, %v312_v11  ;;  %v364_v22 = vrot.slane %v363_v12, 1  ;;  %v370_v23 = vmax.f32 %v368_v4, %v369_v13  ;;  %v1811_v24 = vpop.f32.mrb[11].mxu1 }
 0x132   :  { %v421_v25 = vrot.slane %v420_v15, 1  ;;  %v427_v27 = vmax.f32 %v425_v6, %v426_v16  ;;  %v483_v28 = vrot.slane %v482_v18, 2  ;;  %v478_v36 = vrot.slane %v477_v17, 1 }
 0x133   :  { %v308_v29 = vmax.f32 %v306_v10, %v307_v20  ;;  %v314_v30 = vrot.slane %v313_v21, 1  ;;  %v365_v31 = vmax.f32 %v363_v12, %v364_v22  ;;  %v371_v32 = vrot.slane %v370_v23, 1 }
 0x134   :  { %v422_v34 = vmax.f32 %v420_v15, %v421_v25  ;;  %v428_v35 = vrot.slane %v427_v27, 1  ;;  %v484_v40 = vmax.f32 %v482_v18, %v483_v28  ;;  %v233_v44 = vadd.f32 %v1793_v41, %v1784_v26 }
 0x135   :  { %v315_v37 = vmax.f32 %v313_v21, %v314_v30  ;;  %v372_v39 = vmax.f32 %v370_v23, %v371_v32  ;;  %v530_v43 = vsel %vm529_vm5, %v308_v29, %v365_v31  ;;  %v225_v45 = vadd.f32 %v1784_v26, %v1795_v42 }
 0x136   :  { %v1818_v46 = vpop.f32.mrb[12].mxu1  ;;  %v228_v48 = vadd.f32 %v1784_v26, %v227_v52  ;;  %v429_v50 = vmax.f32 %v427_v27, %v428_v35  ;;  %v538_v51 = vsel %vm301_vm1, %v530_v43, %v422_v34  ;;  %v236_v53 = vadd.f32 %v1802_v47, %v1784_v26 }
 0x137   :  { %v1821_v49 = vpop.f32.mrb[13].mxu1  ;;  %v479_v55 = vmax.f32 %v477_v17, %v478_v36  ;;  %v485_v41 = vrot.slane %v484_v40, 1  ;;  %v531_v56 = vsel %vm529_vm5, %v315_v37, %v372_v39  ;;  %v275_v42 = vmax.f32 %v225_v45, 0.0 }
 0x138   :  { %v1826_v54 = vpop.f32.mrb[14].mxu1  ;;  %v277_v58 = vmax.f32 %v233_v44, 0.0  ;;  %v276_v52 = vmax.f32 %v228_v48, 0.0  ;;  %v539_v60 = vsel %vm301_vm1, %v531_v56, %v429_v50  ;;  %v278_v47 = vmax.f32 %v236_v53, 0.0 }
 0x139   :  { %v1829_v57 = vpop.f32.mrb[15].mxu1  ;;  %v1832_v59 = vsel %vm546_vm6, %v538_v51, %v479_v55  ;;  %v293_v61 = vmax.f32 %v274_v38, %v275_v42  ;;  %v486_v63 = vmax.f32 %v484_v40, %v485_v41  ;;  %v1847_v6 = vadd.f32 %v1507_v9, %v1784_v26 }
 0x13a   :  { %v297_v62 = vmax.f32 %v276_v52, %v277_v58  ;;  %v1839_v0 = vsel %vm529_vm5, %v1832_v59, 0.0  ;;  %v559_v1 = vrot.slane %v1832_v59, 1  ;;  %v562_v5 = vrot.slane %v1832_v59, 2 }
 0x13b   :  { %v295_v2 = vmax.f32 %v293_v61, %v276_v52  ;;  %v1843_v4 = vsel %vm546_vm6, %v539_v60, %v486_v63  ;;  %v1850_v33 = vadd.f32 %v1784_v26, %v240_v14  ;;  %v1862_v41 = vadd.f32 %v1809_v19, %v1784_v26 }
 0x13c   :  { %v299_v3 = vmax.f32 %v297_v62, %v278_v47  ;;  %v244_v56 = vadd.f32 %v1784_v26, %v1811_v24  ;;  %v566_v61 = vrot.slane %v1832_v59, 3  ;;  %v573_v47 = vrot.slane %v1843_v4, 1 }
 0x13d   :  { %v316_v38 = vsel %vm301_vm1, %v295_v2, -inf  ;;  %v373_v8 = vsel %vm358_vm2, %v295_v2, -inf  ;;  %v430_v16 = vsel %vm415_vm3, %v295_v2, -inf  ;;  %v487_v17 = vsel %vm472_vm4, %v295_v2, -inf }
 0x13e   :  { %v323_v7 = vsel %vm301_vm1, %v299_v3, -inf  ;;  %v380_v10 = vsel %vm358_vm2, %v299_v3, -inf  ;;  %v317_v11 = vrot.slane %v316_v38, 4  ;;  %v374_v13 = vrot.slane %v373_v8, 4 }
 0x13f   :  { %v324_v12 = vrot.slane %v323_v7, 4  ;;  %v381_v15 = vrot.slane %v380_v10, 4  ;;  %v437_v9 = vsel %vm415_vm3, %v299_v3, -inf  ;;  %v494_v14 = vsel %vm472_vm4, %v299_v3, -inf }
 0x140   :  { %v318_v18 = vmax.f32 %v316_v38, %v317_v11  ;;  %v375_v21 = vmax.f32 %v373_v8, %v374_v13  ;;  %v431_v23 = vrot.slane %v430_v16, 4  ;;  %v438_v25 = vrot.slane %v437_v9, 4 }
 0x141   :  { %v325_v20 = vmax.f32 %v323_v7, %v324_v12  ;;  %v382_v22 = vmax.f32 %v380_v10, %v381_v15  ;;  %v488_v27 = vrot.slane %v487_v17, 4  ;;  %v495_v28 = vrot.slane %v494_v14, 4 }
 0x142   :  { %v319_v29 = vrot.slane %v318_v18, 2  ;;  %v376_v31 = vrot.slane %v375_v21, 2  ;;  %v432_v34 = vmax.f32 %v430_v16, %v431_v23  ;;  %v439_v35 = vmax.f32 %v437_v9, %v438_v25 }
 0x143   :  { %v326_v30 = vrot.slane %v325_v20, 2  ;;  %v383_v32 = vrot.slane %v382_v22, 2  ;;  %v489_v36 = vmax.f32 %v487_v17, %v488_v27  ;;  %v496_v37 = vmax.f32 %v494_v14, %v495_v28 }
 0x144   :  { %v320_v39 = vmax.f32 %v318_v18, %v319_v29  ;;  %v377_v43 = vmax.f32 %v375_v21, %v376_v31  ;;  %v433_v45 = vrot.slane %v432_v34, 2  ;;  %v440_v48 = vrot.slane %v439_v35, 2 }
 0x145   :  { %v327_v40 = vmax.f32 %v325_v20, %v326_v30  ;;  %v384_v44 = vmax.f32 %v382_v22, %v383_v32  ;;  %v490_v50 = vrot.slane %v489_v36, 2  ;;  %v497_v51 = vrot.slane %v496_v37, 2 }
 0x146   :  { %v321_v53 = vrot.slane %v320_v39, 1  ;;  %v378_v42 = vrot.slane %v377_v43, 1  ;;  %v434_v52 = vmax.f32 %v432_v34, %v433_v45  ;;  %v441_v60 = vmax.f32 %v439_v35, %v440_v48 }
 0x147   :  { %v328_v55 = vrot.slane %v327_v40, 1  ;;  %v385_v58 = vrot.slane %v384_v44, 1  ;;  %v576_v62 = vrot.slane %v1843_v4, 2  ;;  %v491_v63 = vmax.f32 %v489_v36, %v490_v50 }
 0x148   :  { %v580_v2 = vrot.slane %v1843_v4, 3  ;;  %v498_v3 = vmax.f32 %v496_v37, %v497_v51  ;;  %v281_v19 = vmax.f32 %v1847_v6, 0.0  ;;  %v279_v38 = vmax.f32 %v1850_v33, 0.0 }
 0x149   :  { %v435_v7 = vrot.slane %v434_v52, 1  ;;  %v442_v24 = vrot.slane %v441_v60, 1  ;;  %v282_v8 = vmax.f32 %v1862_v41, 0.0  ;;  %v280_v10 = vmax.f32 %v244_v56, 0.0 }
 0x14a   :  { %v322_v11 = vmax.f32 %v320_v39, %v321_v53  ;;  %v329_v12 = vmax.f32 %v327_v40, %v328_v55  ;;  %v379_v13 = vmax.f32 %v377_v43, %v378_v42  ;;  %v386_v15 = vmax.f32 %v384_v44, %v385_v58 }
 0x14b   :  { %v492_v16 = vrot.slane %v491_v63, 1  ;;  %v288_v9 = vmax.f32 %v279_v38, %v280_v10  ;;  %v290_v17 = vmax.f32 %v280_v10, %v281_v19  ;;  %v1875_v14 = vadd.f32 %v1818_v46, %v1784_v26 }
 0x14c   :  { %v1880_v6 = vsel %vm529_vm5, %v559_v1, 0.0  ;;  %v1885_v33 = vsel %vm529_vm5, %v562_v5, 0.0  ;;  %v1888_v18 = vsel %vm529_vm5, %v566_v61, 0.0  ;;  %v499_v20 = vrot.slane %v498_v3, 1 }
 0x14d   :  { %v436_v21 = vmax.f32 %v434_v52, %v435_v7  ;;  %v443_v22 = vmax.f32 %v441_v60, %v442_v24  ;;  %v292_v46 = vmax.f32 %v290_v17, %v282_v8  ;;  %v330_v23 = vsel %vm301_vm1, %v288_v9, -inf }
 0x14e   :  { %v1895_v1 = vsel %vm529_vm5, %v1843_v4, 0.0  ;;  %v1898_v59 = vsel %vm529_vm5, %v573_v47, 0.0  ;;  %v532_v5 = vsel %vm529_vm5, %v322_v11, %v379_v13  ;;  %v533_v25 = vsel %vm529_vm5, %v329_v12, %v386_v15 }
 0x14f   :  { %v1903_v27 = vsel %vm529_vm5, %v576_v62, 0.0  ;;  %v1906_v28 = vsel %vm529_vm5, %v580_v2, 0.0  ;;  %v493_v29 = vmax.f32 %v491_v63, %v492_v16  ;;  %v285_v30 = vmax.f32 %v1875_v14, 0.0 }
 0x150   :  { %v1909_v31 = vmax.f32 %v498_v3, %v499_v20  ;;  %v331_v4 = vrot.slane %v330_v23, 4  ;;  %v257_v32 = vadd.f32 %v1784_v26, %v1821_v49  ;;  %v1915_v34 = vadd.f32 %v1826_v54, %v1784_v26 }
 0x151   :  { %v540_v35 = vsel %vm301_vm1, %v532_v5, %v436_v21  ;;  %v541_v36 = vsel %vm301_vm1, %v533_v25, %v443_v22  ;;  %v337_v37 = vsel %vm301_vm1, %v292_v46, -inf  ;;  %v1922_v39 = vadd.f32 %v1784_v26, %v1829_v57 }
 0x152   :  { %v332_v40 = vmax.f32 %v330_v23, %v331_v4  ;;  %v338_v43 = vrot.slane %v337_v37, 4  ;;  %v387_v44 = vsel %vm358_vm2, %v288_v9, -inf  ;;  %v394_v49 = vsel %vm358_vm2, %v292_v46, -inf }
 0x153   :  { %v388_v45 = vrot.slane %v387_v44, 4  ;;  %v395_v48 = vrot.slane %v394_v49, 4  ;;  %v444_v54 = vsel %vm415_vm3, %v288_v9, -inf  ;;  %v451_v50 = vsel %vm415_vm3, %v292_v46, -inf }
 0x154   :  { %v333_v51 = vrot.slane %v332_v40, 2  ;;  %v339_v53 = vmax.f32 %v337_v37, %v338_v43  ;;  %v445_v55 = vrot.slane %v444_v54, 4  ;;  %v452_v56 = vrot.slane %v451_v50, 4 }
 0x155   :  { %v389_v42 = vmax.f32 %v387_v44, %v388_v45  ;;  %v396_v58 = vmax.f32 %v394_v49, %v395_v48  ;;  %v501_v26 = vsel %vm472_vm4, %v288_v9, -inf  ;;  %v508_v57 = vsel %vm472_vm4, %v292_v46, -inf }
 0x156   :  { %v334_v52 = vmax.f32 %v332_v40, %v333_v51  ;;  %v340_v60 = vrot.slane %v339_v53, 2  ;;  %v446_v61 = vmax.f32 %v444_v54, %v445_v55  ;;  %v453_v47 = vmax.f32 %v451_v50, %v452_v56 }
 0x157   :  { %v390_v62 = vrot.slane %v389_v42, 2  ;;  %v397_v63 = vrot.slane %v396_v58, 2  ;;  %v502_v2 = vrot.slane %v501_v26, 4  ;;  %v509_v3 = vrot.slane %v508_v57, 4 }
 0x158   :  { %v335_v19 = vrot.slane %v334_v52, 1  ;;  %v341_v38 = vmax.f32 %v339_v53, %v340_v60  ;;  %v447_v7 = vrot.slane %v446_v61, 2  ;;  %v454_v24 = vrot.slane %v453_v47, 2 }
 0x159   :  { %v391_v10 = vmax.f32 %v389_v42, %v390_v62  ;;  %v398_v11 = vmax.f32 %v396_v58, %v397_v63  ;;  %v503_v12 = vmax.f32 %v501_v26, %v502_v2  ;;  %v510_v13 = vmax.f32 %v508_v57, %v509_v3 }
 0x15a   :  { %v336_v15 = vmax.f32 %v334_v52, %v335_v19  ;;  %v342_v16 = vrot.slane %v341_v38, 1  ;;  %v448_v9 = vmax.f32 %v446_v61, %v447_v7  ;;  %v455_v17 = vmax.f32 %v453_v47, %v454_v24 }
 0x15b   :  { %v392_v20 = vrot.slane %v391_v10, 1  ;;  %v399_v21 = vrot.slane %v398_v11, 1  ;;  %v504_v22 = vrot.slane %v503_v12, 2  ;;  %v511_v46 = vrot.slane %v510_v13, 2 }
 0x15c   :  { %v343_v23 = vmax.f32 %v341_v38, %v342_v16  ;;  %v449_v5 = vrot.slane %v448_v9, 1  ;;  %v456_v25 = vrot.slane %v455_v17, 1  ;;  %v283_v4 = vmax.f32 %v257_v32, 0.0 }
 0x15d   :  { %v393_v37 = vmax.f32 %v391_v10, %v392_v20  ;;  %v400_v40 = vmax.f32 %v398_v11, %v399_v21  ;;  %v505_v43 = vmax.f32 %v503_v12, %v504_v22  ;;  %v512_v44 = vmax.f32 %v510_v13, %v511_v46 }
 0x15e   :  { %v1931_v49 = vsel %vm546_vm6, %v540_v35, %v493_v29  ;;  %v450_v45 = vmax.f32 %v448_v9, %v449_v5  ;;  %v457_v48 = vmax.f32 %v455_v17, %v456_v25  ;;  %v294_v54 = vmax.f32 %v282_v8, %v283_v4 }
 0x15f   :  { %v506_v50 = vrot.slane %v505_v43, 1  ;;  %v513_v51 = vrot.slane %v512_v44, 1  ;;  %v534_v53 = vsel %vm529_vm5, %v336_v15, %v393_v37  ;;  %v535_v55 = vsel %vm529_vm5, %v343_v23, %v400_v40 }
 0x160   :  { %v1939_v32 = vsel %vm546_vm6, %v541_v36, %v1909_v31  ;;  %v542_v56 = vsel %vm301_vm1, %v534_v53, %v450_v45  ;;  %v543_v29 = vsel %vm301_vm1, %v535_v55, %v457_v48  ;;  %v284_v35 = vmax.f32 %v1922_v39, 0.0 }
 0x161   :  { %v1946_v41 = vsel %vm529_vm5, %v1931_v49, 0.0  ;;  %v587_v8 = vrot.slane %v1931_v49, 1  ;;  %v507_v42 = vmax.f32 %v505_v43, %v506_v50  ;;  %v514_v58 = vmax.f32 %v512_v44, %v513_v51 }
 0x162   :  { %v590_v26 = vrot.slane %v1931_v49, 2  ;;  %v594_v57 = vrot.slane %v1931_v49, 3  ;;  %v296_v31 = vmax.f32 %v294_v54, %v284_v35  ;;  %v298_v36 = vmax.f32 %v284_v35, %v285_v30 }
 0x163   :  { %v1955_v52 = vsel %vm529_vm5, %v1939_v32, 0.0  ;;  %v551_v39 = vsel %vm546_vm6, %v542_v56, %v507_v42  ;;  %v552_v60 = vsel %vm546_vm6, %v543_v29, %v514_v58  ;;  %v286_v61 = vmax.f32 %v1915_v34, 0.0 }
 0x164   :  { %v556_v47 = vrot.slane %v551_v39, 7  ;;  %v1962_v62 = vsel %vm557_vm7, %v551_v39, %v1880_v6  ;;  %v564_v63 = vrot.slane %v551_v39, 1  ;;  %v568_v2 = vrot.slane %v551_v39, 2 }
 0x165   :  { %v571_v3 = vrot.slane %v552_v60, 7  ;;  %v1966_v14 = vsel %vm557_vm7, %v552_v60, %v1898_v59  ;;  %v578_v30 = vrot.slane %v552_v60, 1  ;;  %v582_v19 = vrot.slane %v552_v60, 2 }
 0x166   :  { %v1970_v38 = vsel %vm557_vm7, %v556_v47, %v1839_v0  ;;  %v1974_v34 = vsel %vm557_vm7, %v564_v63, %v1885_v33  ;;  %v1978_v6 = vsel %vm557_vm7, %v568_v2, %v1888_v18  ;;  %v613_v7 = vpack.c.bf16 %v1962_v62, %v1962_v62 }
 0x167   :  { %v1984_v59 = vsel %vm557_vm7, %v571_v3, %v1895_v1  ;;  %v1988_v24 = vsel %vm557_vm7, %v578_v30, %v1903_v27  ;;  %v1992_v0 = vsel %vm557_vm7, %v582_v19, %v1906_v28  ;;  %v612_v33 = vpack.c.bf16 %v1970_v38, %v1970_v38 }
 0x168   :  { %v614_v18 = vpack.c.bf16 %v1974_v34, %v1974_v34  ;;  %v615_v10 = vpack.c.bf16 %v1978_v6, %v1978_v6  ;;  %v616_v1 = vpack.c.bf16 %v1984_v59, %v1984_v59  ;;  %v617_v27 = vpack.c.bf16 %v1966_v14, %v1966_v14 }
 0x169   :  { %v618_v11 = vpack.c.bf16 %v1988_v24, %v1988_v24  ;;  %v619_v28 = vpack.c.bf16 %v1992_v0, %v1992_v0  ;;  %v300_v12 = vmax.f32 %v298_v36, %v286_v61  ;;  %v344_v13 = vsel %vm301_vm1, %v296_v31, -inf }
 0x16a   :  { %v345_v15 = vrot.slane %v344_v13, 4  ;;  %v401_v16 = vsel %vm358_vm2, %v296_v31, -inf  ;;  %v458_v9 = vsel %vm415_vm3, %v296_v31, -inf  ;;  %v515_v17 = vsel %vm472_vm4, %v296_v31, -inf }
 0x16b   :  { %v351_v20 = vsel %vm301_vm1, %v300_v12, -inf  ;;  %v402_v21 = vrot.slane %v401_v16, 4  ;;  %v408_v22 = vsel %vm358_vm2, %v300_v12, -inf  ;;  %v459_v46 = vrot.slane %v458_v9, 4 }
 0x16c   :  { %v346_v23 = vmax.f32 %v344_v13, %v345_v15  ;;  %v352_v5 = vrot.slane %v351_v20, 4  ;;  %v409_v25 = vrot.slane %v408_v22, 4  ;;  %v465_v4 = vsel %vm415_vm3, %v300_v12, -inf }
 0x16d   :  { %v403_v37 = vmax.f32 %v401_v16, %v402_v21  ;;  %v460_v40 = vmax.f32 %v458_v9, %v459_v46  ;;  %v466_v43 = vrot.slane %v465_v4, 4  ;;  %v516_v44 = vrot.slane %v515_v17, 4 }
 0x16e   :  { %v347_v45 = vrot.slane %v346_v23, 2  ;;  %v353_v48 = vmax.f32 %v351_v20, %v352_v5  ;;  %v410_v54 = vmax.f32 %v408_v22, %v409_v25  ;;  %v522_v50 = vsel %vm472_vm4, %v300_v12, -inf }
 0x16f   :  { %v404_v51 = vrot.slane %v403_v37, 2  ;;  %v461_v53 = vrot.slane %v460_v40, 2  ;;  %v467_v55 = vmax.f32 %v465_v4, %v466_v43  ;;  %v517_v56 = vmax.f32 %v515_v17, %v516_v44 }
 0x170   :  { %v348_v29 = vmax.f32 %v346_v23, %v347_v45  ;;  %v354_v35 = vrot.slane %v353_v48, 2  ;;  %v411_v42 = vrot.slane %v410_v54, 2  ;;  %v523_v58 = vrot.slane %v522_v50, 4 }
 0x171   :  { %v405_v31 = vmax.f32 %v403_v37, %v404_v51  ;;  %v462_v36 = vmax.f32 %v460_v40, %v461_v53  ;;  %v468_v39 = vrot.slane %v467_v55, 2  ;;  %v518_v60 = vrot.slane %v517_v56, 2 }
 0x172   :  { %v349_v61 = vrot.slane %v348_v29, 1  ;;  %v355_v47 = vmax.f32 %v353_v48, %v354_v35  ;;  %v412_v63 = vmax.f32 %v410_v54, %v411_v42  ;;  %v524_v2 = vmax.f32 %v522_v50, %v523_v58 }
 0x173   :  { %v406_v3 = vrot.slane %v405_v31, 1  ;;  %v463_v30 = vrot.slane %v462_v36, 1  ;;  %v469_v19 = vmax.f32 %v467_v55, %v468_v39  ;;  %v519_v12 = vmax.f32 %v517_v56, %v518_v60 }
 0x174   :  { %v350_v13 = vmax.f32 %v348_v29, %v349_v61  ;;  %v356_v15 = vrot.slane %v355_v47, 1  ;;  %v413_v16 = vrot.slane %v412_v63, 1  ;;  %v525_v9 = vrot.slane %v524_v2, 2 }
 0x175   :  { %v407_v17 = vmax.f32 %v405_v31, %v406_v3  ;;  %v464_v20 = vmax.f32 %v462_v36, %v463_v30  ;;  %v470_v21 = vrot.slane %v469_v19, 1  ;;  %v520_v22 = vrot.slane %v519_v12, 1 }
 0x176   :  { %v601_v46 = vrot.slane %v1939_v32, 1  ;;  %v357_v23 = vmax.f32 %v355_v47, %v356_v15  ;;  %v414_v5 = vmax.f32 %v412_v63, %v413_v16  ;;  %v526_v25 = vmax.f32 %v524_v2, %v525_v9 }
 0x177   :  { %v604_v4 = vrot.slane %v1939_v32, 2  ;;  %v471_v37 = vmax.f32 %v469_v19, %v470_v21  ;;  %v521_v40 = vmax.f32 %v519_v12, %v520_v22  ;;  %v536_v43 = vsel %vm529_vm5, %v350_v13, %v407_v17 }
 0x178   :  { %v608_v44 = vrot.slane %v1939_v32, 3  ;;  %v527_v45 = vrot.slane %v526_v25, 1  ;;  %v537_v48 = vsel %vm529_vm5, %v357_v23, %v414_v5  ;;  %v544_v54 = vsel %vm301_vm1, %v536_v43, %v464_v20 }
 0x179   :  { %v588_v50 = vsel %vm529_vm5, %v587_v8, 0.0  ;;  %v591_v51 = vsel %vm529_vm5, %v590_v26, 0.0  ;;  %v545_v53 = vsel %vm301_vm1, %v537_v48, %v471_v37  ;;  %v553_v55 = vsel %vm546_vm6, %v544_v54, %v521_v40 }
 0x17a   :  { %v528_v56 = vmax.f32 %v526_v25, %v527_v45  ;;  %v585_v29 = vrot.slane %v553_v55, 7  ;;  %v589_v32 = vsel %vm557_vm7, %v553_v55, %v588_v50  ;;  %v592_v35 = vrot.slane %v553_v55, 1 }
 0x17b   :  { %v595_v42 = vsel %vm529_vm5, %v594_v57, 0.0  ;;  %v602_v58 = vsel %vm529_vm5, %v601_v46, 0.0  ;;  %v596_v8 = vrot.slane %v553_v55, 2  ;;  %v621_v31 = vpack.c.bf16 %v589_v32, %v589_v32 }
 0x17c   :  { %v605_v36 = vsel %vm529_vm5, %v604_v4, 0.0  ;;  %v554_v26 = vsel %vm546_vm6, %v545_v53, %v528_v56  ;;  %v2039_v39 = vsel %vm557_vm7, %v585_v29, %v1946_v41  ;;  %v2042_v60 = vsel %vm557_vm7, %v592_v35, %v591_v51 }
 0x17d   :  { %v2045_v61 = vsel %vm557_vm7, %v596_v8, %v595_v42  ;;  %v599_v49 = vrot.slane %v554_v26, 7  ;;  %v2048_v57 = vsel %vm557_vm7, %v554_v26, %v602_v58  ;;  %v606_v47 = vrot.slane %v554_v26, 1 }
 0x17e   :  { %v610_v63 = vrot.slane %v554_v26, 2  ;;  %v620_v2 = vpack.c.bf16 %v2039_v39, %v2039_v39  ;;  %v622_v3 = vpack.c.bf16 %v2042_v60, %v2042_v60  ;;  %v623_v41 = vpack.c.bf16 %v2045_v61, %v2045_v61 }
 0x17f   :  { %v609_v30 = vsel %vm529_vm5, %v608_v44, 0.0  ;;  %v2059_v19 = vsel %vm557_vm7, %v599_v49, %v1955_v52  ;;  %v2062_v12 = vsel %vm557_vm7, %v606_v47, %v605_v36  ;;  %v625_v13 = vpack.c.bf16 %v2048_v57, %v2048_v57 }
 0x180   :  { %v2067_v15 = vsel %vm557_vm7, %v610_v63, %v609_v30  ;;  %v624_v16 = vpack.c.bf16 %v2059_v19, %v2059_v19  ;;  %v626_v9 = vpack.c.bf16 %v2062_v12, %v2062_v12 }
 0x181   :  { %v627_v17 = vpack.c.bf16 %v2067_v15, %v2067_v15 }
 0x182   :  { %1664 = dma.done.wait [#allocation3], 32768 }
 0x183   :  { %1665 = vsyncadd [#allocation3], 4294934528  ;;  %932 = vmatprep.mubr.bf16.mxu0 %v613_v7  ;;  %1096 = vmatprep.mubr.bf16.mxu1 %v621_v31  ;;  %v633_v52 = vld [vmem:[#allocation2 + $0x8] sm:$0xff]  ;;  %v632_v21 = vld [vmem:[#allocation2] sm:$0xff]  ;;  %s1680_s28 = smov [#allocation10]  }
 0x184   :  { %v761_v20 = vld [vmem:[#allocation2 + $0x408] sm:$0xff]  ;;  %900 = vmatprep.subr.bf16.mxu0 %v633_v52  ;;  %v760_v22 = vld [vmem:[#allocation2 + $0x400] sm:$0xff]  ;;  %v635_v46 = vld [vmem:[#allocation2 + $0x18] sm:$0xff]  ;;  %s1414_s29 = sshll.u32 %s1680_s28, 4  ;;  %s1415_s29 = int_to_ptr.vmem [resolvable:$true] %s1414_s29 }
 0x185   :  { %1064 = vmatprep.subr.bf16.mxu1 %v761_v20  ;;  %v763_v23 = vld [vmem:[#allocation2 + $0x418] sm:$0xff]  ;;  %901 = vmatpush1.bf16.msra.mxu0 %v632_v21  ;;  %v634_v5 = vld [vmem:[#allocation2 + $0x10] sm:$0xff]  ;;  %v637_v4 = vld [vmem:[#allocation2 + $0x28] sm:$0xff]  ;;  %s1638_s30 = scalar_lea.vmem %s1415_s29, 32  ;;  %p1643_p11 = scmp.lt.s32.totalorder %s1415_s29, %s1415_s29 }
 0x186   :  { %1065 = vmatpush1.bf16.msra.mxu1 %v760_v22  ;;  %902 = vmatprep.subr.bf16.mxu0 %v635_v46  ;;  %v762_v25 = vld [vmem:[#allocation2 + $0x410] sm:$0xff]  ;;  %v765_v37 = vld [vmem:[#allocation2 + $0x428] sm:$0xff]  ;;  %v636_v62 = vld [vmem:[#allocation2 + $0x20] sm:$0xff]  ;;  %p1639_p10 = scmp.ne.s32.totalorder %s1415_s29, %s1638_s30  ;;  %p1644_p12 = scmp.lt.s32.totalorder %s1638_s30, %s1638_s30 }
 0x187   :  { %1066 = vmatprep.subr.bf16.mxu1 %v763_v23  ;;  %v764_v7 = vld [vmem:[#allocation2 + $0x420] sm:$0xff]  ;;  %v639_v40 = vld [vmem:[#allocation2 + $0x38] sm:$0xff]  ;;  %v638_v44 = vld [vmem:[#allocation2 + $0x30] sm:$0xff] }
 0x188   :  { %v767_v43 = vld [vmem:[#allocation2 + $0x438] sm:$0xff]  ;;  %v766_v45 = vld [vmem:[#allocation2 + $0x430] sm:$0xff]  ;;  %v641_v48 = vld [vmem:[#allocation2 + $0x48] sm:$0xff]  ;;  %p1645_p13 = por %p1644_p12, %p1643_p11 }
 0x189   :  { %903 = vmatpush1.bf16.msra.mxu0 %v634_v5  ;;  %v769_v54 = vld [vmem:[#allocation2 + $0x448] sm:$0xff]  ;;  %v640_v50 = vld [vmem:[#allocation2 + $0x40] sm:$0xff]  ;;  %v643_v53 = vld [vmem:[#allocation2 + $0x58] sm:$0xff] }
 0x18a   :  { %1067 = vmatpush1.bf16.msra.mxu1 %v762_v25  ;;  %904 = vmatprep.subr.bf16.mxu0 %v637_v4  ;;  %v768_v51 = vld [vmem:[#allocation2 + $0x440] sm:$0xff]  ;;  %v771_v55 = vld [vmem:[#allocation2 + $0x458] sm:$0xff]  ;;  %v642_v56 = vld [vmem:[#allocation2 + $0x50] sm:$0xff]  ;;  %p1646_p0 = pnand %p1645_p13, %p1639_p10 }
 0x18b   :  { %1068 = vmatprep.subr.bf16.mxu1 %v765_v37  ;;  %v770_v29 = vld [vmem:[#allocation2 + $0x450] sm:$0xff]  ;;  %v645_v32 = vld [vmem:[#allocation2 + $0x68] sm:$0xff]  ;;  %v644_v42 = vld [vmem:[#allocation2 + $0x60] sm:$0xff] }
 0x18c   :  { %v773_v35 = vld [vmem:[#allocation2 + $0x468] sm:$0xff]  ;;  %v772_v58 = vld [vmem:[#allocation2 + $0x460] sm:$0xff]  ;;  %v647_v8 = vld [vmem:[#allocation2 + $0x78] sm:$0xff] }
 0x18d   :  { %905 = vmatpush1.bf16.msra.mxu0 %v636_v62  ;;  %v775_v31 = vld [vmem:[#allocation2 + $0x478] sm:$0xff]  ;;  %v646_v36 = vld [vmem:[#allocation2 + $0x70] sm:$0xff]  ;;  %v649_v49 = vld [vmem:[#allocation2 + $0x88] sm:$0xff] }
 0x18e   :  { %1069 = vmatpush1.bf16.msra.mxu1 %v764_v7  ;;  %906 = vmatprep.subr.bf16.mxu0 %v639_v40  ;;  %v774_v26 = vld [vmem:[#allocation2 + $0x470] sm:$0xff]  ;;  %v777_v47 = vld [vmem:[#allocation2 + $0x488] sm:$0xff]  ;;  %v648_v63 = vld [vmem:[#allocation2 + $0x80] sm:$0xff] }
 0x18f   :  { %1070 = vmatprep.subr.bf16.mxu1 %v767_v43  ;;  %v776_v30 = vld [vmem:[#allocation2 + $0x480] sm:$0xff]  ;;  %v651_v52 = vld [vmem:[#allocation2 + $0x98] sm:$0xff]  ;;  %v650_v21 = vld [vmem:[#allocation2 + $0x90] sm:$0xff] }
 0x190   :  { %v779_v20 = vld [vmem:[#allocation2 + $0x498] sm:$0xff]  ;;  %v778_v22 = vld [vmem:[#allocation2 + $0x490] sm:$0xff]  ;;  %v653_v46 = vld [vmem:[#allocation2 + $0xa8] sm:$0xff] }
 0x191   :  { %907 = vmatpush1.bf16.msra.mxu0 %v638_v44  ;;  %v781_v23 = vld [vmem:[#allocation2 + $0x4a8] sm:$0xff]  ;;  %v652_v5 = vld [vmem:[#allocation2 + $0xa0] sm:$0xff]  ;;  %v655_v4 = vld [vmem:[#allocation2 + $0xb8] sm:$0xff] }
 0x192   :  { %1071 = vmatpush1.bf16.msra.mxu1 %v766_v45  ;;  %908 = vmatprep.subr.bf16.mxu0 %v641_v48  ;;  %v780_v25 = vld [vmem:[#allocation2 + $0x4a0] sm:$0xff]  ;;  %v783_v37 = vld [vmem:[#allocation2 + $0x4b8] sm:$0xff]  ;;  %v654_v62 = vld [vmem:[#allocation2 + $0xb0] sm:$0xff] }
 0x193   :  { %1072 = vmatprep.subr.bf16.mxu1 %v769_v54  ;;  %v782_v7 = vld [vmem:[#allocation2 + $0x4b0] sm:$0xff]  ;;  %v657_v40 = vld [vmem:[#allocation2 + $0xc8] sm:$0xff]  ;;  %v656_v44 = vld [vmem:[#allocation2 + $0xc0] sm:$0xff] }
 0x194   :  { %v785_v43 = vld [vmem:[#allocation2 + $0x4c8] sm:$0xff]  ;;  %v784_v45 = vld [vmem:[#allocation2 + $0x4c0] sm:$0xff]  ;;  %v659_v48 = vld [vmem:[#allocation2 + $0xd8] sm:$0xff] }
 0x195   :  { %909 = vmatpush1.bf16.msra.mxu0 %v640_v50  ;;  %v787_v54 = vld [vmem:[#allocation2 + $0x4d8] sm:$0xff]  ;;  %v658_v50 = vld [vmem:[#allocation2 + $0xd0] sm:$0xff]  ;;  %v668_v38 = vld [vmem:[#allocation2 + $0x120] sm:$0xff] }
 0x196   :  { %1073 = vmatpush1.bf16.msra.mxu1 %v768_v51  ;;  %910 = vmatprep.subr.bf16.mxu0 %v643_v53  ;;  %v786_v51 = vld [vmem:[#allocation2 + $0x4d0] sm:$0xff]  ;;  %v661_v53 = vld [vmem:[#allocation2 + $0xe8] sm:$0xff]  ;;  %v671_v39 = vld [vmem:[#allocation2 + $0x138] sm:$0xff] }
 0x197   :  { %1074 = vmatprep.subr.bf16.mxu1 %v771_v55  ;;  %v789_v55 = vld [vmem:[#allocation2 + $0x4e8] sm:$0xff]  ;;  %v800_v61 = vld [vmem:[#allocation2 + $0x540] sm:$0xff]  ;;  %v703_v60 = vld [vmem:[#allocation2 + $0x238] sm:$0xff] }
 0x198   :  { %v673_v6 = vld [vmem:[#allocation2 + $0x148] sm:$0xff]  ;;  %v700_v34 = vld [vmem:[#allocation2 + $0x220] sm:$0xff]  ;;  %v735_v19 = vld [vmem:[#allocation2 + $0x338] sm:$0xff] }
 0x199   :  { %911 = vmatpush1.bf16.msra.mxu0 %v642_v56  ;;  %v660_v56 = vld [vmem:[#allocation2 + $0xe0] sm:$0xff]  ;;  %v705_v14 = vld [vmem:[#allocation2 + $0x248] sm:$0xff]  ;;  %v1566_v24 = vld [vmem:[#allocation9 + $0x68] sm:$0xff]  }
 0x19a   :  { %1075 = vmatpush1.bf16.msra.mxu1 %v770_v29  ;;  %912 = vmatprep.subr.bf16.mxu0 %v645_v32  ;;  %v788_v29 = vld [vmem:[#allocation2 + $0x4e0] sm:$0xff]  ;;  %v663_v32 = vld [vmem:[#allocation2 + $0xf8] sm:$0xff]  ;;  %v737_v0 = vld [vmem:[#allocation2 + $0x348] sm:$0xff] }
 0x19b   :  { %1076 = vmatprep.subr.bf16.mxu1 %v773_v35  ;;  %v791_v35 = vld [vmem:[#allocation2 + $0x4f8] sm:$0xff]  ;;  %v704_v57 = vld [vmem:[#allocation2 + $0x240] sm:$0xff] }
 0x19c   :  { %v732_v59 = vld [vmem:[#allocation2 + $0x320] sm:$0xff] }
 0x19d   :  { %913 = vmatpush1.bf16.msra.mxu0 %v644_v42  ;;  %v662_v42 = vld [vmem:[#allocation2 + $0xf0] sm:$0xff]  ;;  %v736_v15 = vld [vmem:[#allocation2 + $0x340] sm:$0xff] }
 0x19e   :  { %1077 = vmatpush1.bf16.msra.mxu1 %v772_v58  ;;  %914 = vmatprep.subr.bf16.mxu0 %v647_v8  ;;  %v790_v58 = vld [vmem:[#allocation2 + $0x4f0] sm:$0xff]  ;;  %v665_v8 = vld [vmem:[#allocation2 + $0x108] sm:$0xff]  ;;  %v1568_v12 = vld [vmem:[#allocation9 + $0x70] sm:$0xff]  }
 0x19f   :  { %1078 = vmatprep.subr.bf16.mxu1 %v775_v31  ;;  %v793_v31 = vld [vmem:[#allocation2 + $0x508] sm:$0xff] }
 0x1a1   :  { %915 = vmatpush1.bf16.msra.mxu0 %v646_v36  ;;  %v664_v36 = vld [vmem:[#allocation2 + $0x100] sm:$0xff] }
 0x1a2   :  { %1079 = vmatpush1.bf16.msra.mxu1 %v774_v26  ;;  %916 = vmatprep.subr.bf16.mxu0 %v649_v49  ;;  %v792_v26 = vld [vmem:[#allocation2 + $0x500] sm:$0xff]  ;;  %v667_v49 = vld [vmem:[#allocation2 + $0x118] sm:$0xff] }
 0x1a3   :  { %1080 = vmatprep.subr.bf16.mxu1 %v777_v47  ;;  %v795_v47 = vld [vmem:[#allocation2 + $0x518] sm:$0xff] }
 0x1a5   :  { %917 = vmatpush1.bf16.msra.mxu0 %v648_v63  ;;  %v666_v63 = vld [vmem:[#allocation2 + $0x110] sm:$0xff] }
 0x1a6   :  { %1081 = vmatpush1.bf16.msra.mxu1 %v776_v30  ;;  %918 = vmatprep.subr.bf16.mxu0 %v651_v52  ;;  %v794_v30 = vld [vmem:[#allocation2 + $0x510] sm:$0xff]  ;;  %v669_v52 = vld [vmem:[#allocation2 + $0x128] sm:$0xff] }
 0x1a7   :  { %1082 = vmatprep.subr.bf16.mxu1 %v779_v20  ;;  %v797_v20 = vld [vmem:[#allocation2 + $0x528] sm:$0xff] }
 0x1a9   :  { %919 = vmatpush1.bf16.msra.mxu0 %v650_v21  ;;  %v670_v21 = vld [vmem:[#allocation2 + $0x130] sm:$0xff] }
 0x1aa   :  { %1083 = vmatpush1.bf16.msra.mxu1 %v778_v22  ;;  %920 = vmatprep.subr.bf16.mxu0 %v653_v46  ;;  %v798_v22 = vld [vmem:[#allocation2 + $0x530] sm:$0xff]  ;;  %v672_v46 = vld [vmem:[#allocation2 + $0x140] sm:$0xff] }
 0x1ab   :  { %1084 = vmatprep.subr.bf16.mxu1 %v781_v23  ;;  %v803_v23 = vld [vmem:[#allocation2 + $0x558] sm:$0xff] }
 0x1ad   :  { %921 = vmatpush1.bf16.msra.mxu0 %v652_v5  ;;  %v674_v5 = vld [vmem:[#allocation2 + $0x150] sm:$0xff] }
 0x1ae   :  { %1085 = vmatpush1.bf16.msra.mxu1 %v780_v25  ;;  %922 = vmatprep.subr.bf16.mxu0 %v655_v4  ;;  %v802_v25 = vld [vmem:[#allocation2 + $0x550] sm:$0xff]  ;;  %v677_v4 = vld [vmem:[#allocation2 + $0x168] sm:$0xff] }
 0x1af   :  { %1086 = vmatprep.subr.bf16.mxu1 %v783_v37  ;;  %v805_v37 = vld [vmem:[#allocation2 + $0x568] sm:$0xff] }
 0x1b1   :  { %923 = vmatpush1.bf16.msra.mxu0 %v654_v62  ;;  %v676_v62 = vld [vmem:[#allocation2 + $0x160] sm:$0xff] }
 0x1b2   :  { %1087 = vmatpush1.bf16.msra.mxu1 %v782_v7  ;;  %924 = vmatprep.subr.bf16.mxu0 %v657_v40  ;;  %v804_v7 = vld [vmem:[#allocation2 + $0x560] sm:$0xff]  ;;  %v679_v40 = vld [vmem:[#allocation2 + $0x178] sm:$0xff] }
 0x1b3   :  { %1088 = vmatprep.subr.bf16.mxu1 %v785_v43  ;;  %v807_v43 = vld [vmem:[#allocation2 + $0x578] sm:$0xff] }
 0x1b5   :  { %925 = vmatpush1.bf16.msra.mxu0 %v656_v44  ;;  %v678_v44 = vld [vmem:[#allocation2 + $0x170] sm:$0xff] }
 0x1b6   :  { %1089 = vmatpush1.bf16.msra.mxu1 %v784_v45  ;;  %926 = vmatprep.subr.bf16.mxu0 %v659_v48  ;;  %v806_v45 = vld [vmem:[#allocation2 + $0x570] sm:$0xff]  ;;  %v681_v48 = vld [vmem:[#allocation2 + $0x188] sm:$0xff] }
 0x1b7   :  { %1090 = vmatprep.subr.bf16.mxu1 %v787_v54  ;;  %v809_v54 = vld [vmem:[#allocation2 + $0x588] sm:$0xff] }
 0x1b9   :  { %927 = vmatpush1.bf16.msra.mxu0 %v658_v50  ;;  %v680_v50 = vld [vmem:[#allocation2 + $0x180] sm:$0xff] }
 0x1ba   :  { %1091 = vmatpush1.bf16.msra.mxu1 %v786_v51  ;;  %928 = vmatprep.subr.bf16.mxu0 %v661_v53  ;;  %v808_v51 = vld [vmem:[#allocation2 + $0x580] sm:$0xff]  ;;  %v683_v53 = vld [vmem:[#allocation2 + $0x198] sm:$0xff] }
 0x1bb   :  { %1092 = vmatprep.subr.bf16.mxu1 %v789_v55  ;;  %v811_v55 = vld [vmem:[#allocation2 + $0x598] sm:$0xff] }
 0x1bd   :  { %929 = vmatpush1.bf16.msra.mxu0 %v660_v56  ;;  %v682_v56 = vld [vmem:[#allocation2 + $0x190] sm:$0xff] }
 0x1be   :  { %1093 = vmatpush1.bf16.msra.mxu1 %v788_v29  ;;  %930 = vmatprep.subr.bf16.mxu0 %v663_v32  ;;  %v810_v29 = vld [vmem:[#allocation2 + $0x590] sm:$0xff]  ;;  %v685_v32 = vld [vmem:[#allocation2 + $0x1a8] sm:$0xff] }
 0x1bf   :  { %1094 = vmatprep.subr.bf16.mxu1 %v791_v35  ;;  %v813_v35 = vld [vmem:[#allocation2 + $0x5a8] sm:$0xff] }
 0x1c1   :  { %931 = vmatpush1.bf16.msra.mxu0 %v662_v42  ;;  %v684_v42 = vld [vmem:[#allocation2 + $0x1a0] sm:$0xff] }
 0x1c2   :  { %1095 = vmatpush1.bf16.msra.mxu1 %v790_v58  ;;  %941 = vmatprep.subr.bf16.mxu0 %v665_v8  ;;  %v812_v58 = vld [vmem:[#allocation2 + $0x5a0] sm:$0xff]  ;;  %v687_v8 = vld [vmem:[#allocation2 + $0x1b8] sm:$0xff] }
 0x1c3   :  { %1105 = vmatprep.subr.bf16.mxu1 %v793_v31  ;;  %v815_v31 = vld [vmem:[#allocation2 + $0x5b8] sm:$0xff] }
 0x1c4   :  { %933 = vmatmul.mubr.bf16.vlgmr.msra.gmra.mrb[0].mxu0 %v612_v33  ;;  %v796_v33 = vld [vmem:[#allocation2 + $0x520] sm:$0xff] }
 0x1c5   :  { %1097 = vmatmul.mubr.bf16.vlgmr.msra.gmra.mrb[16].mxu1 %v620_v2  ;;  %942 = vmatpush1.bf16.msra.mxu0 %v664_v36  ;;  %v799_v2 = vld [vmem:[#allocation2 + $0x538] sm:$0xff]  ;;  %v686_v36 = vld [vmem:[#allocation2 + $0x1b0] sm:$0xff] }
 0x1c6   :  { %1106 = vmatpush1.bf16.msra.mxu1 %v792_v26  ;;  %943 = vmatprep.subr.bf16.mxu0 %v667_v49  ;;  %v814_v26 = vld [vmem:[#allocation2 + $0x5b0] sm:$0xff]  ;;  %v689_v49 = vld [vmem:[#allocation2 + $0x1c8] sm:$0xff] }
 0x1c7   :  { %1107 = vmatprep.subr.bf16.mxu1 %v795_v47  ;;  %973 = vmatprep.mubr.bf16.mxu0 %v615_v10  ;;  %v801_v10 = vld [vmem:[#allocation2 + $0x548] sm:$0xff] }
 0x1c8   :  { %1137 = vmatprep.mubr.bf16.mxu1 %v623_v41  ;;  %v675_v41 = vld [vmem:[#allocation2 + $0x158] sm:$0xff]  ;;  %v817_v47 = vld [vmem:[#allocation2 + $0x5c8] sm:$0xff] }
 0x1c9   :  { %944 = vmatpush1.bf16.msra.mxu0 %v666_v63  ;;  %v688_v63 = vld [vmem:[#allocation2 + $0x1c0] sm:$0xff] }
 0x1ca   :  { %1108 = vmatpush1.bf16.msra.mxu1 %v794_v30  ;;  %945 = vmatprep.subr.bf16.mxu0 %v669_v52  ;;  %v816_v30 = vld [vmem:[#allocation2 + $0x5c0] sm:$0xff]  ;;  %v691_v52 = vld [vmem:[#allocation2 + $0x1d8] sm:$0xff] }
 0x1cb   :  { %1109 = vmatprep.subr.bf16.mxu1 %v797_v20  ;;  %v819_v20 = vld [vmem:[#allocation2 + $0x5d8] sm:$0xff] }
 0x1cd   :  { %946 = vmatpush1.bf16.msra.mxu0 %v668_v38  ;;  %v690_v38 = vld [vmem:[#allocation2 + $0x1d0] sm:$0xff] }
 0x1ce   :  { %1110 = vmatpush1.bf16.msra.mxu1 %v796_v33  ;;  %947 = vmatprep.subr.bf16.mxu0 %v671_v39  ;;  %v818_v33 = vld [vmem:[#allocation2 + $0x5d0] sm:$0xff]  ;;  %v693_v39 = vld [vmem:[#allocation2 + $0x1e8] sm:$0xff] }
 0x1cf   :  { %1111 = vmatprep.subr.bf16.mxu1 %v799_v2  ;;  %v821_v2 = vld [vmem:[#allocation2 + $0x5e8] sm:$0xff] }
 0x1d1   :  { %948 = vmatpush1.bf16.msra.mxu0 %v670_v21  ;;  %v692_v21 = vld [vmem:[#allocation2 + $0x1e0] sm:$0xff] }
 0x1d2   :  { %1112 = vmatpush1.bf16.msra.mxu1 %v798_v22  ;;  %949 = vmatprep.subr.bf16.mxu0 %v673_v6  ;;  %v820_v22 = vld [vmem:[#allocation2 + $0x5e0] sm:$0xff]  ;;  %v695_v6 = vld [vmem:[#allocation2 + $0x1f8] sm:$0xff] }
 0x1d3   :  { %1113 = vmatprep.subr.bf16.mxu1 %v801_v10  ;;  %v823_v10 = vld [vmem:[#allocation2 + $0x5f8] sm:$0xff] }
 0x1d5   :  { %950 = vmatpush1.bf16.msra.mxu0 %v672_v46  ;;  %v694_v46 = vld [vmem:[#allocation2 + $0x1f0] sm:$0xff] }
 0x1d6   :  { %1114 = vmatpush1.bf16.msra.mxu1 %v800_v61  ;;  %951 = vmatprep.subr.bf16.mxu0 %v675_v41  ;;  %v822_v61 = vld [vmem:[#allocation2 + $0x5f0] sm:$0xff]  ;;  %v697_v41 = vld [vmem:[#allocation2 + $0x208] sm:$0xff] }
 0x1d7   :  { %1115 = vmatprep.subr.bf16.mxu1 %v803_v23  ;;  %v825_v23 = vld [vmem:[#allocation2 + $0x608] sm:$0xff] }
 0x1d9   :  { %952 = vmatpush1.bf16.msra.mxu0 %v674_v5  ;;  %v696_v5 = vld [vmem:[#allocation2 + $0x200] sm:$0xff] }
 0x1da   :  { %1116 = vmatpush1.bf16.msra.mxu1 %v802_v25  ;;  %953 = vmatprep.subr.bf16.mxu0 %v677_v4  ;;  %v824_v25 = vld [vmem:[#allocation2 + $0x600] sm:$0xff]  ;;  %v699_v4 = vld [vmem:[#allocation2 + $0x218] sm:$0xff] }
 0x1db   :  { %1117 = vmatprep.subr.bf16.mxu1 %v805_v37  ;;  %v827_v37 = vld [vmem:[#allocation2 + $0x618] sm:$0xff] }
 0x1dd   :  { %954 = vmatpush1.bf16.msra.mxu0 %v676_v62  ;;  %v698_v62 = vld [vmem:[#allocation2 + $0x210] sm:$0xff] }
 0x1de   :  { %1118 = vmatpush1.bf16.msra.mxu1 %v804_v7  ;;  %955 = vmatprep.subr.bf16.mxu0 %v679_v40  ;;  %v826_v7 = vld [vmem:[#allocation2 + $0x610] sm:$0xff]  ;;  %v701_v40 = vld [vmem:[#allocation2 + $0x228] sm:$0xff] }
 0x1df   :  { %1119 = vmatprep.subr.bf16.mxu1 %v807_v43  ;;  %v829_v43 = vld [vmem:[#allocation2 + $0x628] sm:$0xff] }
 0x1e1   :  { %956 = vmatpush1.bf16.msra.mxu0 %v678_v44  ;;  %v702_v44 = vld [vmem:[#allocation2 + $0x230] sm:$0xff] }
 0x1e2   :  { %1120 = vmatpush1.bf16.msra.mxu1 %v806_v45  ;;  %957 = vmatprep.subr.bf16.mxu0 %v681_v48  ;;  %v830_v45 = vld [vmem:[#allocation2 + $0x630] sm:$0xff]  ;;  %v707_v48 = vld [vmem:[#allocation2 + $0x258] sm:$0xff] }
 0x1e3   :  { %1121 = vmatprep.subr.bf16.mxu1 %v809_v54  ;;  %v835_v54 = vld [vmem:[#allocation2 + $0x658] sm:$0xff] }
 0x1e5   :  { %958 = vmatpush1.bf16.msra.mxu0 %v680_v50  ;;  %v706_v50 = vld [vmem:[#allocation2 + $0x250] sm:$0xff] }
 0x1e6   :  { %1122 = vmatpush1.bf16.msra.mxu1 %v808_v51  ;;  %959 = vmatprep.subr.bf16.mxu0 %v683_v53  ;;  %v834_v51 = vld [vmem:[#allocation2 + $0x650] sm:$0xff]  ;;  %v709_v53 = vld [vmem:[#allocation2 + $0x268] sm:$0xff] }
 0x1e7   :  { %1123 = vmatprep.subr.bf16.mxu1 %v811_v55  ;;  %v837_v55 = vld [vmem:[#allocation2 + $0x668] sm:$0xff] }
 0x1e9   :  { %960 = vmatpush1.bf16.msra.mxu0 %v682_v56  ;;  %v708_v56 = vld [vmem:[#allocation2 + $0x260] sm:$0xff] }
 0x1ea   :  { %1124 = vmatpush1.bf16.msra.mxu1 %v810_v29  ;;  %961 = vmatprep.subr.bf16.mxu0 %v685_v32  ;;  %v836_v29 = vld [vmem:[#allocation2 + $0x660] sm:$0xff]  ;;  %v711_v32 = vld [vmem:[#allocation2 + $0x278] sm:$0xff] }
 0x1eb   :  { %1125 = vmatprep.subr.bf16.mxu1 %v813_v35  ;;  %v839_v35 = vld [vmem:[#allocation2 + $0x678] sm:$0xff] }
 0x1ed   :  { %962 = vmatpush1.bf16.msra.mxu0 %v684_v42  ;;  %v710_v42 = vld [vmem:[#allocation2 + $0x270] sm:$0xff] }
 0x1ee   :  { %1126 = vmatpush1.bf16.msra.mxu1 %v812_v58  ;;  %963 = vmatprep.subr.bf16.mxu0 %v687_v8  ;;  %v838_v58 = vld [vmem:[#allocation2 + $0x670] sm:$0xff]  ;;  %v713_v8 = vld [vmem:[#allocation2 + $0x288] sm:$0xff] }
 0x1ef   :  { %1127 = vmatprep.subr.bf16.mxu1 %v815_v31  ;;  %v841_v31 = vld [vmem:[#allocation2 + $0x688] sm:$0xff] }
 0x1f1   :  { %964 = vmatpush1.bf16.msra.mxu0 %v686_v36  ;;  %v712_v36 = vld [vmem:[#allocation2 + $0x280] sm:$0xff] }
 0x1f2   :  { %1128 = vmatpush1.bf16.msra.mxu1 %v814_v26  ;;  %965 = vmatprep.subr.bf16.mxu0 %v689_v49  ;;  %v840_v26 = vld [vmem:[#allocation2 + $0x680] sm:$0xff]  ;;  %v715_v49 = vld [vmem:[#allocation2 + $0x298] sm:$0xff] }
 0x1f3   :  { %1129 = vmatprep.subr.bf16.mxu1 %v817_v47  ;;  %v843_v47 = vld [vmem:[#allocation2 + $0x698] sm:$0xff] }
 0x1f5   :  { %966 = vmatpush1.bf16.msra.mxu0 %v688_v63  ;;  %v714_v63 = vld [vmem:[#allocation2 + $0x290] sm:$0xff] }
 0x1f6   :  { %1130 = vmatpush1.bf16.msra.mxu1 %v816_v30  ;;  %967 = vmatprep.subr.bf16.mxu0 %v691_v52  ;;  %v842_v30 = vld [vmem:[#allocation2 + $0x690] sm:$0xff]  ;;  %v717_v52 = vld [vmem:[#allocation2 + $0x2a8] sm:$0xff] }
 0x1f7   :  { %1131 = vmatprep.subr.bf16.mxu1 %v819_v20  ;;  %v845_v20 = vld [vmem:[#allocation2 + $0x6a8] sm:$0xff] }
 0x1f9   :  { %968 = vmatpush1.bf16.msra.mxu0 %v690_v38  ;;  %v716_v38 = vld [vmem:[#allocation2 + $0x2a0] sm:$0xff] }
 0x1fa   :  { %1132 = vmatpush1.bf16.msra.mxu1 %v818_v33  ;;  %969 = vmatprep.subr.bf16.mxu0 %v693_v39  ;;  %v844_v33 = vld [vmem:[#allocation2 + $0x6a0] sm:$0xff]  ;;  %v719_v39 = vld [vmem:[#allocation2 + $0x2b8] sm:$0xff] }
 0x1fb   :  { %1133 = vmatprep.subr.bf16.mxu1 %v821_v2  ;;  %v847_v2 = vld [vmem:[#allocation2 + $0x6b8] sm:$0xff] }
 0x1fd   :  { %970 = vmatpush1.bf16.msra.mxu0 %v692_v21  ;;  %v718_v21 = vld [vmem:[#allocation2 + $0x2b0] sm:$0xff] }
 0x1fe   :  { %1134 = vmatpush1.bf16.msra.mxu1 %v820_v22  ;;  %971 = vmatprep.subr.bf16.mxu0 %v695_v6  ;;  %v846_v22 = vld [vmem:[#allocation2 + $0x6b0] sm:$0xff]  ;;  %v721_v6 = vld [vmem:[#allocation2 + $0x2c8] sm:$0xff] }
 0x1ff   :  { %1135 = vmatprep.subr.bf16.mxu1 %v823_v10  ;;  %v849_v10 = vld [vmem:[#allocation2 + $0x6c8] sm:$0xff] }
 0x201   :  { %972 = vmatpush1.bf16.msra.mxu0 %v694_v46  ;;  %v720_v46 = vld [vmem:[#allocation2 + $0x2c0] sm:$0xff] }
 0x202   :  { %1136 = vmatpush1.bf16.msra.mxu1 %v822_v61  ;;  %982 = vmatprep.subr.bf16.mxu0 %v697_v41  ;;  %v848_v61 = vld [vmem:[#allocation2 + $0x6c0] sm:$0xff]  ;;  %v723_v41 = vld [vmem:[#allocation2 + $0x2d8] sm:$0xff] }
 0x203   :  { %1146 = vmatprep.subr.bf16.mxu1 %v825_v23  ;;  %v851_v23 = vld [vmem:[#allocation2 + $0x6d8] sm:$0xff] }
 0x204   :  { %974 = vmatmul.mubr.bf16.vlgmr.msra.gmra.mrb[0].mxu0 %v614_v18  ;;  %v828_v18 = vld [vmem:[#allocation2 + $0x620] sm:$0xff] }
 0x205   :  { %1138 = vmatmul.mubr.bf16.vlgmr.msra.gmra.mrb[16].mxu1 %v622_v3  ;;  %983 = vmatpush1.bf16.msra.mxu0 %v696_v5  ;;  %v831_v3 = vld [vmem:[#allocation2 + $0x638] sm:$0xff]  ;;  %v722_v5 = vld [vmem:[#allocation2 + $0x2d0] sm:$0xff] }
 0x206   :  { %1147 = vmatpush1.bf16.msra.mxu1 %v824_v25  ;;  %984 = vmatprep.subr.bf16.mxu0 %v699_v4  ;;  %v850_v25 = vld [vmem:[#allocation2 + $0x6d0] sm:$0xff]  ;;  %v725_v4 = vld [vmem:[#allocation2 + $0x2e8] sm:$0xff] }
 0x207   :  { %1148 = vmatprep.subr.bf16.mxu1 %v827_v37  ;;  %1014 = vmatprep.mubr.bf16.mxu0 %v617_v27  ;;  %v833_v27 = vld [vmem:[#allocation2 + $0x648] sm:$0xff] }
 0x208   :  { %1178 = vmatprep.mubr.bf16.mxu1 %v625_v13  ;;  %v832_v13 = vld [vmem:[#allocation2 + $0x640] sm:$0xff]  ;;  %v853_v37 = vld [vmem:[#allocation2 + $0x6e8] sm:$0xff] }
 0x209   :  { %985 = vmatpush1.bf16.msra.mxu0 %v698_v62  ;;  %v724_v62 = vld [vmem:[#allocation2 + $0x2e0] sm:$0xff] }
 0x20a   :  { %1149 = vmatpush1.bf16.msra.mxu1 %v826_v7  ;;  %986 = vmatprep.subr.bf16.mxu0 %v701_v40  ;;  %v852_v7 = vld [vmem:[#allocation2 + $0x6e0] sm:$0xff]  ;;  %v727_v40 = vld [vmem:[#allocation2 + $0x2f8] sm:$0xff] }
 0x20b   :  { %1150 = vmatprep.subr.bf16.mxu1 %v829_v43  ;;  %v855_v43 = vld [vmem:[#allocation2 + $0x6f8] sm:$0xff] }
 0x20d   :  { %987 = vmatpush1.bf16.msra.mxu0 %v700_v34  ;;  %v726_v34 = vld [vmem:[#allocation2 + $0x2f0] sm:$0xff] }
 0x20e   :  { %1151 = vmatpush1.bf16.msra.mxu1 %v828_v18  ;;  %988 = vmatprep.subr.bf16.mxu0 %v703_v60  ;;  %v854_v18 = vld [vmem:[#allocation2 + $0x6f0] sm:$0xff]  ;;  %v729_v60 = vld [vmem:[#allocation2 + $0x308] sm:$0xff] }
 0x20f   :  { %1152 = vmatprep.subr.bf16.mxu1 %v831_v3  ;;  %v857_v3 = vld [vmem:[#allocation2 + $0x708] sm:$0xff] }
 0x211   :  { %989 = vmatpush1.bf16.msra.mxu0 %v702_v44  ;;  %v728_v44 = vld [vmem:[#allocation2 + $0x300] sm:$0xff] }
 0x212   :  { %1153 = vmatpush1.bf16.msra.mxu1 %v830_v45  ;;  %990 = vmatprep.subr.bf16.mxu0 %v705_v14  ;;  %v856_v45 = vld [vmem:[#allocation2 + $0x700] sm:$0xff]  ;;  %v731_v14 = vld [vmem:[#allocation2 + $0x318] sm:$0xff] }
 0x213   :  { %1154 = vmatprep.subr.bf16.mxu1 %v833_v27  ;;  %v859_v27 = vld [vmem:[#allocation2 + $0x718] sm:$0xff] }
 0x215   :  { %991 = vmatpush1.bf16.msra.mxu0 %v704_v57  ;;  %v730_v57 = vld [vmem:[#allocation2 + $0x310] sm:$0xff] }
 0x216   :  { %1155 = vmatpush1.bf16.msra.mxu1 %v832_v13  ;;  %992 = vmatprep.subr.bf16.mxu0 %v707_v48  ;;  %v858_v13 = vld [vmem:[#allocation2 + $0x710] sm:$0xff]  ;;  %v733_v48 = vld [vmem:[#allocation2 + $0x328] sm:$0xff] }
 0x217   :  { %1156 = vmatprep.subr.bf16.mxu1 %v835_v54  ;;  %v861_v54 = vld [vmem:[#allocation2 + $0x728] sm:$0xff] }
 0x219   :  { %993 = vmatpush1.bf16.msra.mxu0 %v706_v50  ;;  %v734_v50 = vld [vmem:[#allocation2 + $0x330] sm:$0xff] }
 0x21a   :  { %1157 = vmatpush1.bf16.msra.mxu1 %v834_v51  ;;  %994 = vmatprep.subr.bf16.mxu0 %v709_v53  ;;  %v862_v51 = vld [vmem:[#allocation2 + $0x730] sm:$0xff]  ;;  %v739_v53 = vld [vmem:[#allocation2 + $0x358] sm:$0xff] }
 0x21b   :  { %1158 = vmatprep.subr.bf16.mxu1 %v837_v55  ;;  %v867_v55 = vld [vmem:[#allocation2 + $0x758] sm:$0xff] }
 0x21d   :  { %995 = vmatpush1.bf16.msra.mxu0 %v708_v56  ;;  %v738_v56 = vld [vmem:[#allocation2 + $0x350] sm:$0xff] }
 0x21e   :  { %1159 = vmatpush1.bf16.msra.mxu1 %v836_v29  ;;  %996 = vmatprep.subr.bf16.mxu0 %v711_v32  ;;  %v866_v29 = vld [vmem:[#allocation2 + $0x750] sm:$0xff]  ;;  %v741_v32 = vld [vmem:[#allocation2 + $0x368] sm:$0xff] }
 0x21f   :  { %1160 = vmatprep.subr.bf16.mxu1 %v839_v35  ;;  %v869_v35 = vld [vmem:[#allocation2 + $0x768] sm:$0xff] }
 0x221   :  { %997 = vmatpush1.bf16.msra.mxu0 %v710_v42  ;;  %v740_v42 = vld [vmem:[#allocation2 + $0x360] sm:$0xff] }
 0x222   :  { %1161 = vmatpush1.bf16.msra.mxu1 %v838_v58  ;;  %998 = vmatprep.subr.bf16.mxu0 %v713_v8  ;;  %v868_v58 = vld [vmem:[#allocation2 + $0x760] sm:$0xff]  ;;  %v743_v8 = vld [vmem:[#allocation2 + $0x378] sm:$0xff] }
 0x223   :  { %1162 = vmatprep.subr.bf16.mxu1 %v841_v31  ;;  %v871_v31 = vld [vmem:[#allocation2 + $0x778] sm:$0xff] }
 0x225   :  { %999 = vmatpush1.bf16.msra.mxu0 %v712_v36  ;;  %v742_v36 = vld [vmem:[#allocation2 + $0x370] sm:$0xff] }
 0x226   :  { %1163 = vmatpush1.bf16.msra.mxu1 %v840_v26  ;;  %1000 = vmatprep.subr.bf16.mxu0 %v715_v49  ;;  %v870_v26 = vld [vmem:[#allocation2 + $0x770] sm:$0xff]  ;;  %v745_v49 = vld [vmem:[#allocation2 + $0x388] sm:$0xff] }
 0x227   :  { %1164 = vmatprep.subr.bf16.mxu1 %v843_v47  ;;  %v873_v47 = vld [vmem:[#allocation2 + $0x788] sm:$0xff] }
 0x229   :  { %1001 = vmatpush1.bf16.msra.mxu0 %v714_v63  ;;  %v744_v63 = vld [vmem:[#allocation2 + $0x380] sm:$0xff] }
 0x22a   :  { %1165 = vmatpush1.bf16.msra.mxu1 %v842_v30  ;;  %1002 = vmatprep.subr.bf16.mxu0 %v717_v52  ;;  %v872_v30 = vld [vmem:[#allocation2 + $0x780] sm:$0xff]  ;;  %v747_v52 = vld [vmem:[#allocation2 + $0x398] sm:$0xff] }
 0x22b   :  { %1166 = vmatprep.subr.bf16.mxu1 %v845_v20  ;;  %v875_v20 = vld [vmem:[#allocation2 + $0x798] sm:$0xff] }
 0x22d   :  { %1003 = vmatpush1.bf16.msra.mxu0 %v716_v38  ;;  %v746_v38 = vld [vmem:[#allocation2 + $0x390] sm:$0xff] }
 0x22e   :  { %1167 = vmatpush1.bf16.msra.mxu1 %v844_v33  ;;  %1004 = vmatprep.subr.bf16.mxu0 %v719_v39  ;;  %v874_v33 = vld [vmem:[#allocation2 + $0x790] sm:$0xff]  ;;  %v749_v39 = vld [vmem:[#allocation2 + $0x3a8] sm:$0xff] }
 0x22f   :  { %1168 = vmatprep.subr.bf16.mxu1 %v847_v2  ;;  %v877_v2 = vld [vmem:[#allocation2 + $0x7a8] sm:$0xff] }
 0x231   :  { %1005 = vmatpush1.bf16.msra.mxu0 %v718_v21  ;;  %v748_v21 = vld [vmem:[#allocation2 + $0x3a0] sm:$0xff] }
 0x232   :  { %1169 = vmatpush1.bf16.msra.mxu1 %v846_v22  ;;  %1006 = vmatprep.subr.bf16.mxu0 %v721_v6  ;;  %v876_v22 = vld [vmem:[#allocation2 + $0x7a0] sm:$0xff]  ;;  %v751_v6 = vld [vmem:[#allocation2 + $0x3b8] sm:$0xff] }
 0x233   :  { %1170 = vmatprep.subr.bf16.mxu1 %v849_v10  ;;  %v879_v10 = vld [vmem:[#allocation2 + $0x7b8] sm:$0xff] }
 0x235   :  { %1007 = vmatpush1.bf16.msra.mxu0 %v720_v46  ;;  %v750_v46 = vld [vmem:[#allocation2 + $0x3b0] sm:$0xff] }
 0x236   :  { %1171 = vmatpush1.bf16.msra.mxu1 %v848_v61  ;;  %1008 = vmatprep.subr.bf16.mxu0 %v723_v41  ;;  %v878_v61 = vld [vmem:[#allocation2 + $0x7b0] sm:$0xff]  ;;  %v753_v41 = vld [vmem:[#allocation2 + $0x3c8] sm:$0xff] }
 0x237   :  { %1172 = vmatprep.subr.bf16.mxu1 %v851_v23  ;;  %v881_v23 = vld [vmem:[#allocation2 + $0x7c8] sm:$0xff] }
 0x239   :  { %1009 = vmatpush1.bf16.msra.mxu0 %v722_v5  ;;  %v752_v5 = vld [vmem:[#allocation2 + $0x3c0] sm:$0xff] }
 0x23a   :  { %1173 = vmatpush1.bf16.msra.mxu1 %v850_v25  ;;  %1010 = vmatprep.subr.bf16.mxu0 %v725_v4  ;;  %v880_v25 = vld [vmem:[#allocation2 + $0x7c0] sm:$0xff]  ;;  %v755_v4 = vld [vmem:[#allocation2 + $0x3d8] sm:$0xff] }
 0x23b   :  { %1174 = vmatprep.subr.bf16.mxu1 %v853_v37  ;;  %v883_v37 = vld [vmem:[#allocation2 + $0x7d8] sm:$0xff] }
 0x23d   :  { %1011 = vmatpush1.bf16.msra.mxu0 %v724_v62  ;;  %v754_v62 = vld [vmem:[#allocation2 + $0x3d0] sm:$0xff] }
 0x23e   :  { %1175 = vmatpush1.bf16.msra.mxu1 %v852_v7  ;;  %1012 = vmatprep.subr.bf16.mxu0 %v727_v40  ;;  %v882_v7 = vld [vmem:[#allocation2 + $0x7d0] sm:$0xff]  ;;  %v757_v40 = vld [vmem:[#allocation2 + $0x3e8] sm:$0xff] }
 0x23f   :  { %1176 = vmatprep.subr.bf16.mxu1 %v855_v43  ;;  %v885_v43 = vld [vmem:[#allocation2 + $0x7e8] sm:$0xff] }
 0x241   :  { %1013 = vmatpush1.bf16.msra.mxu0 %v726_v34  ;;  %v756_v34 = vld [vmem:[#allocation2 + $0x3e0] sm:$0xff] }
 0x242   :  { %1177 = vmatpush1.bf16.msra.mxu1 %v854_v18  ;;  %1023 = vmatprep.subr.bf16.mxu0 %v729_v60  ;;  %v884_v18 = vld [vmem:[#allocation2 + $0x7e0] sm:$0xff]  ;;  %v759_v60 = vld [vmem:[#allocation2 + $0x3f8] sm:$0xff] }
 0x243   :  { %1187 = vmatprep.subr.bf16.mxu1 %v857_v3  ;;  %v887_v3 = vld [vmem:[#allocation2 + $0x7f8] sm:$0xff] }
 0x244   :  { %1015 = vmatmul.mubr.bf16.vlgmr.msra.gmra.mrb[0].mxu0 %v616_v1  ;;  %v860_v1 = vld [vmem:[#allocation2 + $0x720] sm:$0xff] }
 0x245   :  { %1179 = vmatmul.mubr.bf16.vlgmr.msra.gmra.mrb[16].mxu1 %v624_v16  ;;  %1024 = vmatpush1.bf16.msra.mxu0 %v728_v44  ;;  %v863_v16 = vld [vmem:[#allocation2 + $0x738] sm:$0xff]  ;;  %v758_v44 = vld [vmem:[#allocation2 + $0x3f0] sm:$0xff] }
 0x246   :  { %1188 = vmatpush1.bf16.msra.mxu1 %v856_v45  ;;  %1025 = vmatprep.subr.bf16.mxu0 %v731_v14  ;;  %v886_v45 = vld [vmem:[#allocation2 + $0x7f0] sm:$0xff] }
 0x247   :  { %1189 = vmatprep.subr.bf16.mxu1 %v859_v27  ;;  %1055 = vmatprep.mubr.bf16.mxu0 %v619_v28  ;;  %v865_v28 = vld [vmem:[#allocation2 + $0x748] sm:$0xff]  ;;  %v1556_v14 = vld [vmem:[#allocation9 + $0x40] sm:$0xff]  }
 0x248   :  { %1219 = vmatprep.mubr.bf16.mxu1 %v627_v17  ;;  %v864_v17 = vld [vmem:[#allocation2 + $0x740] sm:$0xff]  ;;  %v1557_v27 = vld [vmem:[#allocation9] sm:$0xff]  }
 0x249   :  { %1026 = vmatpush1.bf16.msra.mxu0 %v730_v57  ;;  %v1558_v57 = vld [vmem:[#allocation9 + $0x48] sm:$0xff]  }
 0x24a   :  { %1190 = vmatpush1.bf16.msra.mxu1 %v858_v13  ;;  %1027 = vmatprep.subr.bf16.mxu0 %v733_v48  ;;  %v1559_v13 = vld [vmem:[#allocation9 + $0x8] sm:$0xff]   ;;  %v1560_v48 = vld [vmem:[#allocation9 + $0x50] sm:$0xff]  }
 0x24b   :  { %1191 = vmatprep.subr.bf16.mxu1 %v861_v54  ;;  %v1561_v54 = vld [vmem:[#allocation9 + $0x10] sm:$0xff]  }
 0x24d   :  { %1028 = vmatpush1.bf16.msra.mxu0 %v732_v59  ;;  %v1562_v59 = vld [vmem:[#allocation9 + $0x58] sm:$0xff]  }
 0x24e   :  { %1192 = vmatpush1.bf16.msra.mxu1 %v860_v1  ;;  %1029 = vmatprep.subr.bf16.mxu0 %v735_v19  ;;  %v1563_v1 = vld [vmem:[#allocation9 + $0x18] sm:$0xff]   ;;  %v1564_v19 = vld [vmem:[#allocation9 + $0x60] sm:$0xff]  }
 0x24f   :  { %1193 = vmatprep.subr.bf16.mxu1 %v863_v16  ;;  %v1565_v16 = vld [vmem:[#allocation9 + $0x20] sm:$0xff]  }
 0x251   :  { %1030 = vmatpush1.bf16.msra.mxu0 %v734_v50  ;;  %v1570_v50 = vld [vmem:[#allocation9 + $0x78] sm:$0xff]  }
 0x252   :  { %1194 = vmatpush1.bf16.msra.mxu1 %v862_v51  ;;  %1031 = vmatprep.subr.bf16.mxu0 %v737_v0  ;;  %v1571_v51 = vld [vmem:[#allocation9 + $0x38] sm:$0xff]   ;;  %v890_v0 = vlaneseq }
 0x253   :  { %1195 = vmatprep.subr.bf16.mxu1 %v865_v28 }
 0x254   :  { %v891_v28 = vshrl.u32 %v890_v0, 7 }
 0x255   :  { %1032 = vmatpush1.bf16.msra.mxu0 %v736_v15 }
 0x256   :  { %1196 = vmatpush1.bf16.msra.mxu1 %v864_v17  ;;  %1033 = vmatprep.subr.bf16.mxu0 %v739_v53  ;;  %v892_v15 = vsub.s32 0, %v891_v28  ;;  %v888_v17 = vld [vmem:[%s2142_s4] sm:$0x3]  ;;  %v896_v53 = vsub.s32 1, %v891_v28 }
 0x257   :  { %1197 = vmatprep.subr.bf16.mxu1 %v867_v55 }
 0x258   :  { %v893_v55 = vrot.slane %v888_v17, %v892_v15 }
 0x259   :  { %1034 = vmatpush1.bf16.msra.mxu0 %v738_v56  ;;  %v897_v56 = vrot.slane %v888_v17, %v896_v53 }
 0x25a   :  { %1198 = vmatpush1.bf16.msra.mxu1 %v866_v29  ;;  %1035 = vmatprep.subr.bf16.mxu0 %v741_v32 }
 0x25b   :  { %1199 = vmatprep.subr.bf16.mxu1 %v869_v35 }
 0x25d   :  { %1036 = vmatpush1.bf16.msra.mxu0 %v740_v42 }
 0x25e   :  { %1200 = vmatpush1.bf16.msra.mxu1 %v868_v58  ;;  %1037 = vmatprep.subr.bf16.mxu0 %v743_v8 }
 0x25f   :  { %1201 = vmatprep.subr.bf16.mxu1 %v871_v31 }
 0x261   :  { %1038 = vmatpush1.bf16.msra.mxu0 %v742_v36 }
 0x262   :  { %1202 = vmatpush1.bf16.msra.mxu1 %v870_v26  ;;  %1039 = vmatprep.subr.bf16.mxu0 %v745_v49 }
 0x263   :  { %1203 = vmatprep.subr.bf16.mxu1 %v873_v47 }
 0x265   :  { %1040 = vmatpush1.bf16.msra.mxu0 %v744_v63 }
 0x266   :  { %1204 = vmatpush1.bf16.msra.mxu1 %v872_v30  ;;  %1041 = vmatprep.subr.bf16.mxu0 %v747_v52 }
 0x267   :  { %1205 = vmatprep.subr.bf16.mxu1 %v875_v20 }
 0x269   :  { %1042 = vmatpush1.bf16.msra.mxu0 %v746_v38 }
 0x26a   :  { %1206 = vmatpush1.bf16.msra.mxu1 %v874_v33  ;;  %1043 = vmatprep.subr.bf16.mxu0 %v749_v39  ;;  %v1443_v39 = vld [vmem:[%s2144_s6] ss:$0 sm:$0xff] }
 0x26b   :  { %1207 = vmatprep.subr.bf16.mxu1 %v877_v2 }
 0x26d   :  { %1044 = vmatpush1.bf16.msra.mxu0 %v748_v21 }
 0x26e   :  { %1208 = vmatpush1.bf16.msra.mxu1 %v876_v22  ;;  %1045 = vmatprep.subr.bf16.mxu0 %v751_v6 }
 0x26f   :  { %1209 = vmatprep.subr.bf16.mxu1 %v879_v10 }
 0x271   :  { %1046 = vmatpush1.bf16.msra.mxu0 %v750_v46 }
 0x272   :  { %1210 = vmatpush1.bf16.msra.mxu1 %v878_v61  ;;  %1047 = vmatprep.subr.bf16.mxu0 %v753_v41 }
 0x273   :  { %1211 = vmatprep.subr.bf16.mxu1 %v881_v23 }
 0x275   :  { %1048 = vmatpush1.bf16.msra.mxu0 %v752_v5 }
 0x276   :  { %1212 = vmatpush1.bf16.msra.mxu1 %v880_v25  ;;  %1049 = vmatprep.subr.bf16.mxu0 %v755_v4 }
 0x277   :  { %1213 = vmatprep.subr.bf16.mxu1 %v883_v37 }
 0x279   :  { %1050 = vmatpush1.bf16.msra.mxu0 %v754_v62 }
 0x27a   :  { %1214 = vmatpush1.bf16.msra.mxu1 %v882_v7  ;;  %1051 = vmatprep.subr.bf16.mxu0 %v757_v40 }
 0x27b   :  { %1215 = vmatprep.subr.bf16.mxu1 %v885_v43 }
 0x27d   :  { %1052 = vmatpush1.bf16.msra.mxu0 %v756_v34 }
 0x27e   :  { %1216 = vmatpush1.bf16.msra.mxu1 %v884_v18  ;;  %1053 = vmatprep.subr.bf16.mxu0 %v759_v60 }
 0x27f   :  { %1217 = vmatprep.subr.bf16.mxu1 %v887_v3 }
 0x281   :  { %1054 = vmatpush1.bf16.msra.mxu0 %v758_v44 }
 0x282   :  { %1218 = vmatpush1.bf16.msra.mxu1 %v886_v45  ;;  %1471 = vmatprep.subr.bf16.mxu0 %v1556_v14 }
 0x284   :  { %1056 = vmatmul.mubr.bf16.vlgmr.msra.gmra.mrb[0].mxu0 %v618_v11  ;;  %v1567_v11 = vld [vmem:[#allocation9 + $0x28] sm:$0xff]  }
 0x285   :  { %1220 = vmatmul.mubr.bf16.vlgmr.msra.gmra.mrb[16].mxu1 %v626_v9  ;;  %1472 = vmatpush3.bf16.msra.mxu0 %v1557_v27  ;;  %v1569_v9 = vld [vmem:[#allocation9 + $0x30] sm:$0xff]  }
 0x286   :  { %1473 = vmatprep.subr.bf16.mxu0 %v1558_v57 }
 0x289   :  { %1474 = vmatpush3.bf16.msra.mxu0 %v1559_v13 }
 0x28a   :  { %1475 = vmatprep.subr.bf16.mxu0 %v1560_v48 }
 0x28d   :  { %1476 = vmatpush3.bf16.msra.mxu0 %v1561_v54 }
 0x28e   :  { %1477 = vmatprep.subr.bf16.mxu0 %v1562_v59 }
 0x291   :  { %1478 = vmatpush3.bf16.msra.mxu0 %v1563_v1 }
 0x292   :  { %1479 = vmatprep.subr.bf16.mxu0 %v1564_v19 }
 0x295   :  { %1480 = vmatpush3.bf16.msra.mxu0 %v1565_v16 }
 0x296   :  { %1481 = vmatprep.subr.bf16.mxu0 %v1566_v24 }
 0x299   :  { %1482 = vmatpush3.bf16.msra.mxu0 %v1567_v11 }
 0x29a   :  { %1483 = vmatprep.subr.bf16.mxu0 %v1568_v12 }
 0x29d   :  { %1484 = vmatpush3.bf16.msra.mxu0 %v1569_v9 }
 0x29e   :  { %1485 = vmatprep.subr.bf16.mxu0 %v1570_v50 }
 0x2a1   :  { %1486 = vmatpush3.bf16.msra.mxu0 %v1571_v51 }
 0x357   :  { %v1057_v29 = vpop.f32.mrb[0].mxu0 }
 0x358   :  { %v1221_v32 = vpop.f32.mrb[16].mxu1  ;;  %v1513_v35 = vadd.f32 %v1057_v29, %v893_v55  ;;  %v1059_v42 = vpop.f32.mrb[1].mxu0 }
 0x359   :  { %v1223_v58 = vpop.f32.mrb[17].mxu1  ;;  %v1515_v8 = vadd.f32 %v1059_v42, %v897_v56  ;;  %v1061_v31 = vpop.f32.mrb[2].mxu0 }
 0x35a   :  { %v1225_v36 = vpop.f32.mrb[18].mxu1  ;;  %v1514_v26 = vadd.f32 %v1513_v35, %v1221_v32  ;;  %v1062_v49 = vpop.f32.mrb[3].mxu0 }
 0x35b   :  { %v1226_v47 = vpop.f32.mrb[19].mxu1  ;;  %v1516_v63 = vadd.f32 %v1515_v8, %v1223_v58 }
 0x35c   :  { %v1228_v30 = vmax.f32 %v1514_v26, 0.0 }
 0x35d   :  { %v1229_v52 = vmax.f32 %v1516_v63, 0.0 }
 0x35e   :  { %v1230_v38 = vpack.c.bf16 %v1228_v30, %v1228_v30 }
 0x35f   :  { %v1231_v20 = vpack.c.bf16 %v1229_v52, %v1229_v52 }
 0x361   :  { %1399 = vmatprep.mubr.bf16.mxu0 %v1231_v20 }
 0x362   :  { %1400 = vmatmul.mubr.bf16.vlgmr.msra.gmra.mrb[4].mxu0 %v1230_v38 }
 0x435   :  { %v1487_v33 = vpop.f32.mrb[4].mxu0 }
 0x436   :  { %v1488_v2 = vpop.f32.mrb[5].mxu0 }
 0x437   :  { %v1489_v21 = vadd.f32 %v1488_v2, %v1487_v33  ;;  %v1490_v22 = vpop.f32.mrb[6].mxu0 }
 0x438   :  { %v1491_v6 = vpop.f32.mrb[7].mxu0 }
 0x439   :  { %v1402_v10 = vadd.f32 %v1489_v21, %v1443_v39 }
 0x43b   :  { %1407 = vst [vmem:[#allocation10] sm:$0x3] %v1402_v10 }
 0x43c   :  { %1649 = shalt.err (!%p1646_p0)
}
 0x43d   :  { %s1650_s6 = scalar_lea.hbm %s2145_s7, 32 }
 0x43e   :  { %p1651_p1 = scmp.ne.s32.totalorder %s2145_s7, %s1650_s6  ;;  %p1654_p2 = scmp.lt.u32.totalorder %s1650_s6, %s2145_s7 }
 0x440   :  { %p1656_p3 = pnand %p1654_p2, %p1651_p1 }
 0x442   :  { %1659 = shalt.err (!%p1656_p3)
}
 0x443   :  { %1417 = dma.vmem_to_hbm [thread:$0]  %s1415_s29, 32, %s2145_s7, [#allocation6]  }
 0x444   :  { %1666 = dma.done.wait [#allocation6], 32  }
 0x445   :  { %1667 = vsyncadd [#allocation6], 4294967264 }
 0x446   :  { %1421 = vsyncpa [#allocation5], 1 }
 0x447   :  { %1422 = vsyncpa [#allocation8], 1 }
 0x448   :  { %1423 = vsyncpa [#allocation6], 1 }
 0x449   :  { %1424 = vsyncmov [#allocation3] }
 0x44c   :  { %s1425_s16 = vpop.sfrf %1424 }
 0x44d   :  { %p1460_p4 = scmp.ne.s32.totalorder %s1425_s16, 0 }
 0x44f   :  { %1429 = shalt.err (%p1460_p4)  }

</bundles_post_ra>
